<compile_context>
chip_gen: v5e
topology: v5e:2x2
jax: 0.10.0
libtpu: 0.0.40
codegen_flags: <defaults>
</compile_context>

<pallas_src>
import math
from functools import partial

import jax
import jax.numpy as jnp
import numpy as np
from jax.experimental import pallas as pl
from jax.experimental.pallas import tpu as pltpu

_LN_EPS = 1e-5


def _layer_norm(x, gamma, beta, eps=_LN_EPS):
    mu = jnp.mean(x, axis=-1, keepdims=True)
    xc = x - mu
    var = jnp.mean(xc * xc, axis=-1, keepdims=True)
    return xc * jax.lax.rsqrt(var + eps) * gamma + beta


# -----------------------------------------------------------------------------
# Kernel A: cross-attention + out-projection accumulation + residual + LN1.
# grid = (batch_tiles, head_groups); head-group axis is the "arbitrary"
# reduction axis, per-group weight slices arrive via BlockSpec index maps.
# -----------------------------------------------------------------------------
def _attn_kernel(adapted_ref,           # (TB*Q, H) f32   pre-adapted queries (resident)
                 feat_ref,              # (TB*S, H) bf16  flattened multimodal features
                 wq_ref, bq_ref,        # (H, GW) bf16 / (1, GW) f32  (1/sqrt(hd) folded in)
                 wk_ref, bk_ref,        # (H, GW) bf16 / (1, GW) f32
                 wv_ref, bv_ref,        # (H, GW) bf16 / (1, GW) f32
                 wo_ref, bo_ref,        # (GW, H) bf16 / (1, H) f32
                 ln1g_ref, ln1b_ref,    # (1, H) f32
                 fused_ref,             # (TB*Q, H) f32 output: LN1(adapted + attn)
                 acc_ref,               # scratch (TB*Q, H) f32: out-proj accumulator
                 *, block_b: int, head_dim: int):
    hg = pl.program_id(1)
    n_hg = pl.num_programs(1)

    f32, bf16 = jnp.float32, jnp.bfloat16
    tb = block_b
    mq = adapted_ref.shape[0]
    ms = feat_ref.shape[0]
    q_len = mq // tb
    s_len = ms // tb
    GW = wq_ref.shape[1]
    g = GW // head_dim                      # heads per grid step (static)

    @pl.when(hg == 0)
    def _init():
        acc_ref[...] = jnp.zeros_like(acc_ref)

    def dense(x_bf16, w_ref, b_ref):
        # bf16 MXU operands, f32 accumulation.
        return jnp.dot(x_bf16, w_ref[...], preferred_element_type=f32) + b_ref[...]

    adapted = adapted_ref[...]                              # (TB*Q, H) f32
    feat = feat_ref[...]                                    # (TB*S, H) bf16

    # Projections on flattened slabs (MXU M = TB*Q / TB*S).
    q2 = dense(adapted.astype(bf16), wq_ref, bq_ref)        # (TB*Q, GW) f32
    k2 = dense(feat, wk_ref, bk_ref)                        # (TB*S, GW) f32
    v2 = dense(feat, wv_ref, bv_ref)

    k3 = k2.reshape(tb, s_len, GW).astype(bf16)
    v3 = v2.reshape(tb, s_len, GW).astype(bf16)

    # Per-head softmax within the group via lane masks (keeps the contraction
    # lane-aligned at GW; avoids lane-splitting reshapes / transposes).
    if g > 1:
        lane = jax.lax.broadcasted_iota(jnp.int32, (1, GW), 1)

    ctx2 = None
    for i in range(g):
        if g > 1:
            m = ((lane >= i * head_dim) & (lane < (i + 1) * head_dim)).astype(f32)
            q2i = q2 * m
        else:
            q2i = q2
        q3 = q2i.reshape(tb, q_len, GW).astype(bf16)
        s = jnp.einsum("bqd,bkd->bqk", q3, k3, preferred_element_type=f32)
        s = s - jnp.max(s, axis=-1, keepdims=True)
        p = jnp.exp(s)
        p = p * pl.reciprocal(jnp.sum(p, axis=-1, keepdims=True), approx=True)
        c = jnp.einsum("bqk,bkd->bqd", p.astype(bf16), v3, preferred_element_type=f32)
        c2 = c.reshape(mq, GW)
        if g > 1:
            c2 = c2 * m                                     # keep only this head's lanes
        ctx2 = c2 if ctx2 is None else ctx2 + c2

    # This group's slice of the output projection, accumulated over groups.
    acc_ref[...] += jnp.dot(ctx2.astype(bf16), wo_ref[...], preferred_element_type=f32)

    @pl.when(hg == n_hg - 1)
    def _finalize():
        attn_out = acc_ref[...] + bo_ref[...]
        fused_ref[...] = _layer_norm(adapted + attn_out, ln1g_ref[...], ln1b_ref[...])


# -----------------------------------------------------------------------------
# Kernel B: FFN with the 4H dimension K-tiled over the grid (streamed w1/w2,
# bounded GELU intermediate) + residual + LN2; bf16 output.
# -----------------------------------------------------------------------------
def _ffn_kernel(fused_ref,              # (TB*Q, H) f32
                w1_ref, b1_ref,         # (H, TF) bf16 / (1, TF) f32
                w2_ref, b2_ref,         # (TF, H) bf16 / (1, H) f32
                ln2g_ref, ln2b_ref,     # (1, H) f32
                o_ref,                  # (TB*Q, H) bf16 output
                acc_ref):               # scratch (TB*Q, H) f32
    j = pl.program_id(1)
    nj = pl.num_programs(1)
    f32, bf16 = jnp.float32, jnp.bfloat16

    @pl.when(j == 0)
    def _init():
        acc_ref[...] = jnp.zeros_like(acc_ref)

    fused = fused_ref[...]                                              # (rows, H) f32
    h1 = jnp.dot(fused.astype(bf16), w1_ref[...], preferred_element_type=f32) + b1_ref[...]
    # tanh-approx GELU (EUP path, frees VALU slots next to the FFN matmuls).
    c = math.sqrt(2.0 / math.pi)
    h1 = 0.5 * h1 * (1.0 + jnp.tanh(c * (h1 + 0.044715 * h1 * h1 * h1)))
    acc_ref[...] += jnp.dot(h1.astype(bf16), w2_ref[...], preferred_element_type=f32)

    @pl.when(j == nj - 1)
    def _finalize():
        ffn = acc_ref[...] + b2_ref[...]
        o_ref[...] = _layer_norm(fused + ffn, ln2g_ref[...], ln2b_ref[...]).astype(o_ref.dtype)


# -----------------------------------------------------------------------------
# Generation-aware configuration helpers.
# -----------------------------------------------------------------------------
def _tpu_vmem_and_cores():
    """Per-TensorCore VMEM budget and multi-TensorCore detection."""
    vmem = None
    multi_tc = False
    try:
        info = pltpu.get_tpu_info()
        vmem = getattr(info, "vmem_capacity_bytes", None)
        for attr in ("num_tensorcores", "num_cores", "tensorcores_per_chip"):
            n = getattr(info, attr, None)
            if isinstance(n, int) and n > 1:
                multi_tc = True
    except Exception:
        pass
    try:
        kind = jax.devices()[0].device_kind.lower()
        if "v7" in kind or "7x" in kind:
            multi_tc = True
    except Exception:
        pass
    if not vmem or vmem <= 0:
        vmem = 64 * 1024 * 1024                  # conservative default (v7x-sized)
    cap = min((int(vmem) * 7) // 8, 110 * 1024 * 1024)   # ~56 MiB v7x, ~110 MiB v5e/v6e
    if multi_tc:
        cap = min(cap, 56 * 1024 * 1024)         # 64 MiB is per TensorCore on v7x
    return int(cap), multi_tc


def _pick_block_b(B, Q, S, H, GW, vmem_cap, multi_tc):
    """Largest batch tile that fits the VMEM budget and fills the MXU M dim
    (~512 rows).  The '>= 2 batch tiles' rule only applies on multi-TC chips."""
    per_b = (2 * S * H * 2       # feat tile (bf16, double-buffered)
             + 2 * Q * H * 4     # fused output tile (f32, double-buffered)
             + Q * H * 4         # attention accumulator scratch (f32)
             + Q * H * 4)        # pre-adapted query tile (f32, resident)
    fixed = 2 * (3 * H * GW + GW * H) * 2 + 16 * H * 4   # head-group weight slices + biases/LN
    budget = int(vmem_cap * 0.6)                          # headroom for compiler temporaries
    max_b_mem = max(1, (budget - fixed) // max(per_b, 1))
    rows = max(Q, S, 1)
    desired = max(1, min(B, max_b_mem, max(1, 512 // rows)))
    block_b = 1
    for d in range(1, B + 1):
        if B % d == 0 and d <= desired:
            block_b = d
    if multi_tc and B // block_b < 2:
        for d in range(block_b - 1, 0, -1):
            if B % d == 0 and B // d >= 2:
                block_b = d
                break
    return block_b


# -----------------------------------------------------------------------------
# Wrapper
# -----------------------------------------------------------------------------
def universal_qformer_forward(multimodal_features, domain, params, *, num_heads,
                              block_b=None, heads_per_step=None):
    """multimodal_features: dict of (B,S_i,H) or (B,H) arrays; domain: str key."""
    qtok = params["query_tokens"][0]                       # (Q, H)
    Q, H = qtok.shape
    assert H % num_heads == 0
    hd = H // num_heads

    feats = []
    for f in multimodal_features.values():
        if f.ndim == 2:
            f = f[:, None, :]
        feats.append(f)
    feat = jnp.concatenate(feats, axis=1)                  # (B, S, H)
    B, S, _ = feat.shape

    # Layout requirements (f32 sublane tile = 8, lane tile = 128).
    # TODO(synk): pad + mask ragged multimodal sequence lengths / odd head dims
    # that do not meet these alignment requirements.
    assert H % 128 == 0, "hidden_size must be a multiple of 128"
    assert Q % 8 == 0 and S % 8 == 0, "num_query_tokens and total multimodal seq must be multiples of 8"

    if heads_per_step is None:
        heads_per_step = max(1, 128 // hd)
    g = heads_per_step
    GW = g * hd
    assert num_heads % g == 0 and (GW % 128 == 0 or GW == H), \
        "heads_per_step * head_dim must be 128-lane aligned"
    n_hg = num_heads // g

    vmem_cap, multi_tc = _tpu_vmem_and_cores()
    if block_b is None:
        block_b = _pick_block_b(B, Q, S, H, GW, vmem_cap, multi_tc)
    assert B % block_b == 0
    nb = B // block_b
    TBQ = block_b * Q

    f32, bf16 = jnp.float32, jnp.bfloat16
    scale = 1.0 / math.sqrt(hd)

    def T(w):
        return jnp.asarray(w, f32).T

    def row(b):
        return jnp.asarray(b, f32)[None, :]

    # Domain adapter is batch-invariant -> hoisted out of the kernel.
    wd, bd = params["adapters"][domain]
    adapted = qtok.astype(f32) @ T(wd) + jnp.asarray(bd, f32)[None, :]   # (Q, H) f32
    adapted_t = jnp.tile(adapted, (block_b, 1))                          # (TB*Q, H) f32

    in_w, in_b = params["attn_in_proj_w"], params["attn_in_proj_b"]
    wq, wk, wv = in_w[:H], in_w[H:2 * H], in_w[2 * H:]
    bq, bk, bv = in_b[:H], in_b[H:2 * H], in_b[2 * H:]

    # (out,in) -> (in,out); MXU operands bf16, biases / LN params f32;
    # 1/sqrt(hd) folded into Wq/bq.
    attn_weights = [
        (T(wq) * scale).astype(bf16), row(bq) * scale,
        T(wk).astype(bf16), row(bk),
        T(wv).astype(bf16), row(bv),
        T(params["attn_out_proj_w"]).astype(bf16), row(params["attn_out_proj_b"]),
        row(params["ln1_g"]), row(params["ln1_b"]),
    ]
    feat_flat = feat.reshape(B * S, H).astype(bf16)

    def const2d(arr):
        return pl.BlockSpec(arr.shape, lambda i, j: (0, 0))

    attn_in_specs = [
        const2d(adapted_t),                                          # resident, batch-invariant
        pl.BlockSpec((block_b * S, H), lambda b, h: (b, 0)),         # per-tile features
        pl.BlockSpec((H, GW), lambda b, h: (0, h)), pl.BlockSpec((1, GW), lambda b, h: (0, h)),  # wq, bq
        pl.BlockSpec((H, GW), lambda b, h: (0, h)), pl.BlockSpec((1, GW), lambda b, h: (0, h)),  # wk, bk
        pl.BlockSpec((H, GW), lambda b, h: (0, h)), pl.BlockSpec((1, GW), lambda b, h: (0, h)),  # wv, bv
        pl.BlockSpec((GW, H), lambda b, h: (h, 0)),                  # wo (group row slice)
        const2d(attn_weights[7]),                                    # bo
        const2d(attn_weights[8]), const2d(attn_weights[9]),          # ln1 gamma / beta
    ]

    fused = pl.pallas_call(
        partial(_attn_kernel, block_b=block_b, head_dim=hd),
        out_shape=jax.ShapeDtypeStruct((B * Q, H), f32),
        grid=(nb, n_hg),
        in_specs=attn_in_specs,
        out_specs=pl.BlockSpec((TBQ, H), lambda b, h: (b, 0)),
        scratch_shapes=[pltpu.VMEM((TBQ, H), f32)],
        compiler_params=pltpu.CompilerParams(
            dimension_semantics=("parallel", "arbitrary"),
            vmem_limit_bytes=vmem_cap),
    )(adapted_t, feat_flat, *attn_weights)

    # ---- FFN: K-tiled over the 4H dimension (streamed w1/w2 chunks) --------
    F4 = 4 * H
    tf = min(512, F4)
    assert F4 % tf == 0
    nf = F4 // tf

    ffn_weights = [
        T(params["ffn_w1"]).astype(bf16), row(params["ffn_b1"]),
        T(params["ffn_w2"]).astype(bf16), row(params["ffn_b2"]),
        row(params["ln2_g"]), row(params["ln2_b"]),
    ]
    ffn_in_specs = [
        pl.BlockSpec((TBQ, H), lambda i, j: (i, 0)),                 # fused (resident over chunks)
        pl.BlockSpec((H, tf), lambda i, j: (0, j)),                  # w1 chunk
        pl.BlockSpec((1, tf), lambda i, j: (0, j)),                  # b1 chunk
        pl.BlockSpec((tf, H), lambda i, j: (j, 0)),                  # w2 chunk
        const2d(ffn_weights[3]),                                     # b2
        const2d(ffn_weights[4]), const2d(ffn_weights[5]),            # ln2 gamma / beta
    ]

    out_flat = pl.pallas_call(
        _ffn_kernel,
        out_shape=jax.ShapeDtypeStruct((B * Q, H), bf16),            # bf16 writeback
        grid=(nb, nf),
        in_specs=ffn_in_specs,
        out_specs=pl.BlockSpec((TBQ, H), lambda i, j: (i, 0)),
        scratch_shapes=[pltpu.VMEM((TBQ, H), f32)],
        compiler_params=pltpu.CompilerParams(
            dimension_semantics=("parallel", "arbitrary"),
            vmem_limit_bytes=vmem_cap),
    )(fused, *ffn_weights)
    return out_flat.reshape(B, Q, H)


# -----------------------------------------------------------------------------
# Pure-JAX reference (exact softmax / erf-GELU, f32) for a sanity check.
# -----------------------------------------------------------------------------
def reference_forward(multimodal_features, domain, params, *, num_heads):
    H = params["query_tokens"].shape[-1]
    B = next(iter(multimodal_features.values())).shape[0]
    qtok = jnp.broadcast_to(params["query_tokens"], (B,) + params["query_tokens"].shape[1:])
    wd, bd = params["adapters"][domain]
    adapted = jnp.einsum("bqh,oh->bqo", qtok, wd) + bd

    feats = []
    for f in multimodal_features.values():
        if f.ndim == 2:
            f = f[:, None, :]
        feats.append(f)
    feat = jnp.concatenate(feats, axis=1)

    in_w, in_b = params["attn_in_proj_w"], params["attn_in_proj_b"]
    wq, wk, wv = in_w[:H], in_w[H:2 * H], in_w[2 * H:]
    bq, bk, bv = in_b[:H], in_b[H:2 * H], in_b[2 * H:]
    q = jnp.einsum("bqh,oh->bqo", adapted, wq) + bq
    k = jnp.einsum("bsh,oh->bso", feat, wk) + bk
    v = jnp.einsum("bsh,oh->bso", feat, wv) + bv
    hd = H // num_heads

    def split(x):
        Bx, Sx, _ = x.shape
        return x.reshape(Bx, Sx, num_heads, hd).transpose(0, 2, 1, 3)

    qh, kh, vh = split(q), split(k), split(v)
    scores = jnp.einsum("bnqd,bnkd->bnqk", qh, kh) / math.sqrt(hd)
    p = jax.nn.softmax(scores, axis=-1)
    ctx = jnp.einsum("bnqk,bnkd->bnqd", p, vh).transpose(0, 2, 1, 3).reshape(B, -1, H)
    attn = jnp.einsum("bqh,oh->bqo", ctx, params["attn_out_proj_w"]) + params["attn_out_proj_b"]

    def ln(x, gamma, beta):
        mu = jnp.mean(x, -1, keepdims=True)
        var = jnp.mean((x - mu) ** 2, -1, keepdims=True)
        return (x - mu) / jnp.sqrt(var + _LN_EPS) * gamma + beta

    fused = ln(adapted + attn, params["ln1_g"], params["ln1_b"])
    h1 = jnp.einsum("bqh,oh->bqo", fused, params["ffn_w1"]) + params["ffn_b1"]
    h1 = 0.5 * h1 * (1.0 + jax.lax.erf(h1 / math.sqrt(2.0)))          # exact GELU
    out = jnp.einsum("bqh,oh->bqo", h1, params["ffn_w2"]) + params["ffn_b2"]
    return ln(fused + out, params["ln2_g"], params["ln2_b"])


# -----------------------------------------------------------------------------
# Deterministic parameter init + example run
# -----------------------------------------------------------------------------
def make_params(key, hidden_size, num_query_tokens):
    H = hidden_size
    domains = ["medical", "autonomous", "robotics", "education", "general"]
    keys = jax.random.split(key, 20)
    scl = 0.05

    def lin(k, out_dim, in_dim):
        kw, kb = jax.random.split(k)
        return (jax.random.normal(kw, (out_dim, in_dim), jnp.float32) * scl,
                jax.random.normal(kb, (out_dim,), jnp.float32) * scl)

    adapters = {d: lin(keys[i], H, H) for i, d in enumerate(domains)}

    params = {
        "query_tokens": jax.random.normal(keys[5], (1, num_query_tokens, H), jnp.float32) * scl,
        "adapters": adapters,
        "attn_in_proj_w": jax.random.normal(keys[6], (3 * H, H), jnp.float32) * scl,
        "attn_in_proj_b": jax.random.normal(keys[7], (3 * H,), jnp.float32) * scl,
        "attn_out_proj_w": jax.random.normal(keys[8], (H, H), jnp.float32) * scl,
        "attn_out_proj_b": jax.random.normal(keys[9], (H,), jnp.float32) * scl,
        "ln1_g": 1.0 + 0.05 * jax.random.normal(keys[14], (H,), jnp.float32),
        "ln1_b": 0.05 * jax.random.normal(keys[15], (H,), jnp.float32),
        "ln2_g": 1.0 + 0.05 * jax.random.normal(keys[16], (H,), jnp.float32),
        "ln2_b": 0.05 * jax.random.normal(keys[17], (H,), jnp.float32),
        "ffn_w1": jax.random.normal(keys[10], (4 * H, H), jnp.float32) * scl,
        "ffn_b1": jax.random.normal(keys[11], (4 * H,), jnp.float32) * scl,
        "ffn_w2": jax.random.normal(keys[12], (H, 4 * H), jnp.float32) * scl,
        "ffn_b2": jax.random.normal(keys[13], (H,), jnp.float32) * scl,
    }
    return params


if __name__ == "__main__":
    # Small, module-consistent, layout-friendly shapes.  head_dim = 64
    # exercises the new grouped-head path (previously hd % 128 was required).
    B, H, Q, NH = 4, 256, 8, 4
    key = jax.random.PRNGKey(0)
    kp, kv, kt = jax.random.split(key, 3)

    params = make_params(kp, hidden_size=H, num_query_tokens=Q)

    multimodal_features = {
        "vision": jax.random.normal(kv, (B, 7, H), jnp.float32),   # (B, S_v, H)
        "text":   jax.random.normal(kt, (B, H), jnp.float32),      # (B, H) -> unsqueezed
    }
    domain = "medical"   # DomainType.MEDICAL

    out = universal_qformer_forward(multimodal_features, domain, params, num_heads=NH)
    out = jax.block_until_ready(out)

    ref = reference_forward(multimodal_features, domain, params, num_heads=NH)
    assert out.shape == (B, Q, H)
    # bf16 MXU operands / bf16 output, EUP approx reciprocal, tanh-GELU
    # -> slightly looser tolerance vs the exact f32 reference.
    np.testing.assert_allclose(np.asarray(out.astype(jnp.float32)),
                               np.asarray(ref), rtol=5e-2, atol=5e-2)

    print("KERNEL_OK")
</pallas_src>

<mosaic_0001>
module attributes {stable_mosaic.version = 11 : i64} {
  func.func @_attn_kernel(%arg0: i32, %arg1: i32, %arg2: memref<32x256xf32, #tpu.memory_space<vmem>>, %arg3: memref<32x256xbf16, #tpu.memory_space<vmem>>, %arg4: memref<256x128xbf16, #tpu.memory_space<vmem>>, %arg5: memref<1x128xf32, #tpu.memory_space<vmem>>, %arg6: memref<256x128xbf16, #tpu.memory_space<vmem>>, %arg7: memref<1x128xf32, #tpu.memory_space<vmem>>, %arg8: memref<256x128xbf16, #tpu.memory_space<vmem>>, %arg9: memref<1x128xf32, #tpu.memory_space<vmem>>, %arg10: memref<128x256xbf16, #tpu.memory_space<vmem>>, %arg11: memref<1x256xf32, #tpu.memory_space<vmem>>, %arg12: memref<1x256xf32, #tpu.memory_space<vmem>>, %arg13: memref<1x256xf32, #tpu.memory_space<vmem>>, %arg14: memref<32x256xf32, #tpu.memory_space<vmem>>, %arg15: memref<32x256xf32, #tpu.memory_space<vmem>>) attributes {dimension_semantics = [#tpu.dimension_semantics<parallel>, #tpu.dimension_semantics<arbitrary>], iteration_bounds = array<i64: 1, 2>, scalar_prefetch = 0 : i64, scratch_operands = 1 : i64, tpu.core_type = #tpu.core_type<tc>, window_params = [{pipeline_mode = #tpu.pipeline_mode<synchronous>, transform_indices = @transform_0, window_bounds = array<i64: 32, 256>}, {transform_indices = @transform_1, window_bounds = array<i64: 32, 256>}, {transform_indices = @transform_2, window_bounds = array<i64: 256, 128>}, {transform_indices = @transform_3, window_bounds = array<i64: 1, 128>}, {transform_indices = @transform_4, window_bounds = array<i64: 256, 128>}, {transform_indices = @transform_5, window_bounds = array<i64: 1, 128>}, {transform_indices = @transform_6, window_bounds = array<i64: 256, 128>}, {transform_indices = @transform_7, window_bounds = array<i64: 1, 128>}, {transform_indices = @transform_8, window_bounds = array<i64: 128, 256>}, {pipeline_mode = #tpu.pipeline_mode<synchronous>, transform_indices = @transform_9, window_bounds = array<i64: 1, 256>}, {pipeline_mode = #tpu.pipeline_mode<synchronous>, transform_indices = @transform_10, window_bounds = array<i64: 1, 256>}, {pipeline_mode = #tpu.pipeline_mode<synchronous>, transform_indices = @transform_11, window_bounds = array<i64: 1, 256>}, {transform_indices = @transform_12, window_bounds = array<i64: 32, 256>}]} {
    %c0_i32 = arith.constant 0 : i32
    %0 = arith.cmpi eq, %arg1, %c0_i32 : i32
    %1 = arith.extui %0 : i1 to i32
    %c0_i32_0 = arith.constant 0 : i32
    %2 = arith.cmpi ne, %1, %c0_i32_0 : i32
    scf.if %2 {
      %cst_36 = arith.constant 0.000000e+00 : f32
      %90 = vector.broadcast %cst_36 : f32 to vector<32x256xf32>
      %c0_37 = arith.constant 0 : index
      %c0_38 = arith.constant 0 : index
      %91 = vector.load %arg15[%c0_37, %c0_38] : memref<32x256xf32, #tpu.memory_space<vmem>>, vector<32x256xf32>
      tpu.vector_store %arg15[%c0_37, %c0_38], %90 {strides = array<i32>} : memref<32x256xf32, #tpu.memory_space<vmem>>, vector<32x256xf32>,
    } else {
    }
    %c0 = arith.constant 0 : index
    %c0_1 = arith.constant 0 : index
    %3 = vector.load %arg2[%c0, %c0_1] : memref<32x256xf32, #tpu.memory_space<vmem>>, vector<32x256xf32>
    %c0_2 = arith.constant 0 : index
    %c0_3 = arith.constant 0 : index
    %4 = vector.load %arg3[%c0_2, %c0_3] : memref<32x256xbf16, #tpu.memory_space<vmem>>, vector<32x256xbf16>
    %5 = arith.truncf %3 : vector<32x256xf32> to vector<32x256xbf16>
    %c0_4 = arith.constant 0 : index
    %c0_5 = arith.constant 0 : index
    %6 = vector.load %arg4[%c0_4, %c0_5] : memref<256x128xbf16, #tpu.memory_space<vmem>>, vector<256x128xbf16>
    %cst = arith.constant dense<0.000000e+00> : vector<32x128xf32>
    %7 = tpu.matmul %5, %6, %cst {dimension_numbers = #tpu.dot_dimension_numbers<[1], [0], [0], [1], [0, 0, 1, 1], [], []>} : vector<32x256xbf16>, vector<256x128xbf16>, vector<32x128xf32> -> vector<32x128xf32>
    %c0_6 = arith.constant 0 : index
    %c0_7 = arith.constant 0 : index
    %8 = vector.load %arg5[%c0_6, %c0_7] : memref<1x128xf32, #tpu.memory_space<vmem>>, vector<1x128xf32>
    %9 = vector.broadcast %8 : vector<1x128xf32> to vector<32x128xf32>
    %10 = arith.addf %7, %9 : vector<32x128xf32>
    %c0_8 = arith.constant 0 : index
    %c0_9 = arith.constant 0 : index
    %11 = vector.load %arg6[%c0_8, %c0_9] : memref<256x128xbf16, #tpu.memory_space<vmem>>, vector<256x128xbf16>
    %cst_10 = arith.constant dense<0.000000e+00> : vector<32x128xf32>
    %12 = tpu.matmul %4, %11, %cst_10 {dimension_numbers = #tpu.dot_dimension_numbers<[1], [0], [0], [1], [0, 0, 1, 1], [], []>} : vector<32x256xbf16>, vector<256x128xbf16>, vector<32x128xf32> -> vector<32x128xf32>
    %c0_11 = arith.constant 0 : index
    %c0_12 = arith.constant 0 : index
    %13 = vector.load %arg7[%c0_11, %c0_12] : memref<1x128xf32, #tpu.memory_space<vmem>>, vector<1x128xf32>
    %14 = vector.broadcast %13 : vector<1x128xf32> to vector<32x128xf32>
    %15 = arith.addf %12, %14 : vector<32x128xf32>
    %c0_13 = arith.constant 0 : index
    %c0_14 = arith.constant 0 : index
    %16 = vector.load %arg8[%c0_13, %c0_14] : memref<256x128xbf16, #tpu.memory_space<vmem>>, vector<256x128xbf16>
    %cst_15 = arith.constant dense<0.000000e+00> : vector<32x128xf32>
    %17 = tpu.matmul %4, %16, %cst_15 {dimension_numbers = #tpu.dot_dimension_numbers<[1], [0], [0], [1], [0, 0, 1, 1], [], []>} : vector<32x256xbf16>, vector<256x128xbf16>, vector<32x128xf32> -> vector<32x128xf32>
    %c0_16 = arith.constant 0 : index
    %c0_17 = arith.constant 0 : index
    %18 = vector.load %arg9[%c0_16, %c0_17] : memref<1x128xf32, #tpu.memory_space<vmem>>, vector<1x128xf32>
    %19 = vector.broadcast %18 : vector<1x128xf32> to vector<32x128xf32>
    %20 = arith.addf %17, %19 : vector<32x128xf32>
    %21 = vector.shape_cast %15 : vector<32x128xf32> to vector<4x8x128xf32>
    %22 = arith.truncf %21 : vector<4x8x128xf32> to vector<4x8x128xbf16>
    %23 = vector.shape_cast %20 : vector<32x128xf32> to vector<4x8x128xf32>
    %24 = arith.truncf %23 : vector<4x8x128xf32> to vector<4x8x128xbf16>
    %25 = tpu.iota {dimensions = array<i32: 1>} : vector<1x128xi32>
    %c0_i32_18 = arith.constant 0 : i32
    %26 = vector.broadcast %c0_i32_18 : i32 to vector<1x128xi32>
    %27 = arith.cmpi sge, %25, %26 : vector<1x128xi32>
    %c64_i32 = arith.constant 64 : i32
    %28 = vector.broadcast %c64_i32 : i32 to vector<1x128xi32>
    %29 = arith.cmpi slt, %25, %28 : vector<1x128xi32>
    %30 = arith.andi %27, %29 : vector<1x128xi1>
    %31 = arith.extui %30 : vector<1x128xi1> to vector<1x128xi32>
    %32 = arith.sitofp %31 : vector<1x128xi32> to vector<1x128xf32>
    %33 = vector.broadcast %32 : vector<1x128xf32> to vector<32x128xf32>
    %34 = arith.mulf %10, %33 : vector<32x128xf32>
    %35 = vector.shape_cast %34 : vector<32x128xf32> to vector<4x8x128xf32>
    %36 = arith.truncf %35 : vector<4x8x128xf32> to vector<4x8x128xbf16>
    "tpu.trace_start"() <{level = 10 : i32, message = "bqd,bkd->bqk"}> : () -> ()
    %cst_19 = arith.constant dense<0.000000e+00> : vector<4x8x8xf32>
    %37 = tpu.matmul %36, %22, %cst_19 {dimension_numbers = #tpu.dot_dimension_numbers<[2], [2], [1], [1], [0, 0, 0, 1, 1, 1], [0], [0]>} : vector<4x8x128xbf16>, vector<4x8x128xbf16>, vector<4x8x8xf32> -> vector<4x8x8xf32>
    "tpu.trace_stop"() : () -> ()
    %cst_20 = arith.constant dense<0xFF800000> : vector<4x8xf32>
    %38 = vector.multi_reduction <maximumf>, %37, %cst_20 [2] : vector<4x8x8xf32> to vector<4x8xf32>
    %39 = vector.shape_cast %38 : vector<4x8xf32> to vector<4x8x1xf32>
    %40 = vector.broadcast %39 : vector<4x8x1xf32> to vector<4x8x8xf32>
    %41 = arith.subf %37, %40 : vector<4x8x8xf32>
    %42 = math.exp %41 : vector<4x8x8xf32>
    %cst_21 = arith.constant dense<0.000000e+00> : vector<4x8xf32>
    %43 = vector.multi_reduction <add>, %42, %cst_21 [2] : vector<4x8x8xf32> to vector<4x8xf32>
    %44 = vector.shape_cast %43 : vector<4x8xf32> to vector<4x8x1xf32>
    %45 = tpu.reciprocal %44 {approx = true} : vector<4x8x1xf32> -> vector<4x8x1xf32>
    %46 = vector.broadcast %45 : vector<4x8x1xf32> to vector<4x8x8xf32>
    %47 = arith.mulf %42, %46 : vector<4x8x8xf32>
    %48 = arith.truncf %47 : vector<4x8x8xf32> to vector<4x8x8xbf16>
    "tpu.trace_start"() <{level = 10 : i32, message = "bqk,bkd->bqd"}> : () -> ()
    %cst_22 = arith.constant dense<0.000000e+00> : vector<4x8x128xf32>
    %49 = tpu.matmul %48, %24, %cst_22 {dimension_numbers = #tpu.dot_dimension_numbers<[2], [1], [1], [2], [0, 0, 0, 1, 1, 2], [0], [0]>} : vector<4x8x8xbf16>, vector<4x8x128xbf16>, vector<4x8x128xf32> -> vector<4x8x128xf32>
    "tpu.trace_stop"() : () -> ()
    %50 = vector.shape_cast %49 : vector<4x8x128xf32> to vector<32x128xf32>
    %51 = vector.broadcast %32 : vector<1x128xf32> to vector<32x128xf32>
    %52 = arith.mulf %50, %51 : vector<32x128xf32>
    %c64_i32_23 = arith.constant 64 : i32
    %53 = vector.broadcast %c64_i32_23 : i32 to vector<1x128xi32>
    %54 = arith.cmpi sge, %25, %53 : vector<1x128xi32>
    %c128_i32 = arith.constant 128 : i32
    %55 = vector.broadcast %c128_i32 : i32 to vector<1x128xi32>
    %56 = arith.cmpi slt, %25, %55 : vector<1x128xi32>
    %57 = arith.andi %54, %56 : vector<1x128xi1>
    %58 = arith.extui %57 : vector<1x128xi1> to vector<1x128xi32>
    %59 = arith.sitofp %58 : vector<1x128xi32> to vector<1x128xf32>
    %60 = vector.broadcast %59 : vector<1x128xf32> to vector<32x128xf32>
    %61 = arith.mulf %10, %60 : vector<32x128xf32>
    %62 = vector.shape_cast %61 : vector<32x128xf32> to vector<4x8x128xf32>
    %63 = arith.truncf %62 : vector<4x8x128xf32> to vector<4x8x128xbf16>
    "tpu.trace_start"() <{level = 10 : i32, message = "bqd,bkd->bqk"}> : () -> ()
    %cst_24 = arith.constant dense<0.000000e+00> : vector<4x8x8xf32>
    %64 = tpu.matmul %63, %22, %cst_24 {dimension_numbers = #tpu.dot_dimension_numbers<[2], [2], [1], [1], [0, 0, 0, 1, 1, 1], [0], [0]>} : vector<4x8x128xbf16>, vector<4x8x128xbf16>, vector<4x8x8xf32> -> vector<4x8x8xf32>
    "tpu.trace_stop"() : () -> ()
    %cst_25 = arith.constant dense<0xFF800000> : vector<4x8xf32>
    %65 = vector.multi_reduction <maximumf>, %64, %cst_25 [2] : vector<4x8x8xf32> to vector<4x8xf32>
    %66 = vector.shape_cast %65 : vector<4x8xf32> to vector<4x8x1xf32>
    %67 = vector.broadcast %66 : vector<4x8x1xf32> to vector<4x8x8xf32>
    %68 = arith.subf %64, %67 : vector<4x8x8xf32>
    %69 = math.exp %68 : vector<4x8x8xf32>
    %cst_26 = arith.constant dense<0.000000e+00> : vector<4x8xf32>
    %70 = vector.multi_reduction <add>, %69, %cst_26 [2] : vector<4x8x8xf32> to vector<4x8xf32>
    %71 = vector.shape_cast %70 : vector<4x8xf32> to vector<4x8x1xf32>
    %72 = tpu.reciprocal %71 {approx = true} : vector<4x8x1xf32> -> vector<4x8x1xf32>
    %73 = vector.broadcast %72 : vector<4x8x1xf32> to vector<4x8x8xf32>
    %74 = arith.mulf %69, %73 : vector<4x8x8xf32>
    %75 = arith.truncf %74 : vector<4x8x8xf32> to vector<4x8x8xbf16>
    "tpu.trace_start"() <{level = 10 : i32, message = "bqk,bkd->bqd"}> : () -> ()
    %cst_27 = arith.constant dense<0.000000e+00> : vector<4x8x128xf32>
    %76 = tpu.matmul %75, %24, %cst_27 {dimension_numbers = #tpu.dot_dimension_numbers<[2], [1], [1], [2], [0, 0, 0, 1, 1, 2], [0], [0]>} : vector<4x8x8xbf16>, vector<4x8x128xbf16>, vector<4x8x128xf32> -> vector<4x8x128xf32>
    "tpu.trace_stop"() : () -> ()
    %77 = vector.shape_cast %76 : vector<4x8x128xf32> to vector<32x128xf32>
    %78 = vector.broadcast %59 : vector<1x128xf32> to vector<32x128xf32>
    %79 = arith.mulf %77, %78 : vector<32x128xf32>
    %80 = arith.addf %52, %79 : vector<32x128xf32>
    %c0_28 = arith.constant 0 : index
    %c0_29 = arith.constant 0 : index
    %81 = vector.load %arg15[%c0_28, %c0_29] : memref<32x256xf32, #tpu.memory_space<vmem>>, vector<32x256xf32>
    %82 = arith.truncf %80 : vector<32x128xf32> to vector<32x128xbf16>
    %c0_30 = arith.constant 0 : index
    %c0_31 = arith.constant 0 : index
    %83 = vector.load %arg10[%c0_30, %c0_31] : memref<128x256xbf16, #tpu.memory_space<vmem>>, vector<128x256xbf16>
    %cst_32 = arith.constant dense<0.000000e+00> : vector<32x256xf32>
    %84 = tpu.matmul %82, %83, %cst_32 {dimension_numbers = #tpu.dot_dimension_numbers<[1], [0], [0], [1], [0, 0, 1, 1], [], []>} : vector<32x128xbf16>, vector<128x256xbf16>, vector<32x256xf32> -> vector<32x256xf32>
    %85 = arith.addf %81, %84 : vector<32x256xf32>
    %c0_33 = arith.constant 0 : index
    %c0_34 = arith.constant 0 : index
    %86 = vector.load %arg15[%c0_33, %c0_34] : memref<32x256xf32, #tpu.memory_space<vmem>>, vector<32x256xf32>
    tpu.vector_store %arg15[%c0_33, %c0_34], %85 {strides = array<i32>} : memref<32x256xf32, #tpu.memory_space<vmem>>, vector<32x256xf32>,
    %c1_i32 = arith.constant 1 : i32
    %87 = arith.cmpi eq, %arg1, %c1_i32 : i32
    %88 = arith.extui %87 : i1 to i32
    %c0_i32_35 = arith.constant 0 : i32
    %89 = arith.cmpi ne, %88, %c0_i32_35 : i32
    scf.if %89 {
      %c0_36 = arith.constant 0 : index
      %c0_37 = arith.constant 0 : index
      %90 = vector.load %arg15[%c0_36, %c0_37] : memref<32x256xf32, #tpu.memory_space<vmem>>, vector<32x256xf32>
      %c0_38 = arith.constant 0 : index
      %c0_39 = arith.constant 0 : index
      %91 = vector.load %arg11[%c0_38, %c0_39] : memref<1x256xf32, #tpu.memory_space<vmem>>, vector<1x256xf32>
      %92 = vector.broadcast %91 : vector<1x256xf32> to vector<32x256xf32>
      %93 = arith.addf %90, %92 : vector<32x256xf32>
      %94 = arith.addf %3, %93 : vector<32x256xf32>
      %c0_40 = arith.constant 0 : index
      %c0_41 = arith.constant 0 : index
      %95 = vector.load %arg12[%c0_40, %c0_41] : memref<1x256xf32, #tpu.memory_space<vmem>>, vector<1x256xf32>
      %c0_42 = arith.constant 0 : index
      %c0_43 = arith.constant 0 : index
      %96 = vector.load %arg13[%c0_42, %c0_43] : memref<1x256xf32, #tpu.memory_space<vmem>>, vector<1x256xf32>
      %cst_44 = arith.constant dense<0.000000e+00> : vector<32xf32>
      %97 = vector.multi_reduction <add>, %94, %cst_44 [1] : vector<32x256xf32> to vector<32xf32>
      %98 = vector.shape_cast %97 : vector<32xf32> to vector<32x1xf32>
      %cst_45 = arith.constant 2.560000e+02 : f32
      %99 = vector.broadcast %cst_45 : f32 to vector<32x1xf32>
      %100 = arith.divf %98, %99 : vector<32x1xf32>
      %101 = vector.broadcast %100 : vector<32x1xf32> to vector<32x256xf32>
      %102 = arith.subf %94, %101 : vector<32x256xf32>
      %103 = arith.mulf %102, %102 : vector<32x256xf32>
      %cst_46 = arith.constant dense<0.000000e+00> : vector<32xf32>
      %104 = vector.multi_reduction <add>, %103, %cst_46 [1] : vector<32x256xf32> to vector<32xf32>
      %105 = vector.shape_cast %104 : vector<32xf32> to vector<32x1xf32>
      %cst_47 = arith.constant 2.560000e+02 : f32
      %106 = vector.broadcast %cst_47 : f32 to vector<32x1xf32>
      %107 = arith.divf %105, %106 : vector<32x1xf32>
      %cst_48 = arith.constant 9.99999974E-6 : f32
      %108 = vector.broadcast %cst_48 : f32 to vector<32x1xf32>
      %109 = arith.addf %107, %108 : vector<32x1xf32>
      %110 = math.rsqrt %109 : vector<32x1xf32>
      %111 = vector.broadcast %110 : vector<32x1xf32> to vector<32x256xf32>
      %112 = arith.mulf %102, %111 : vector<32x256xf32>
      %113 = vector.broadcast %95 : vector<1x256xf32> to vector<32x256xf32>
      %114 = arith.mulf %112, %113 : vector<32x256xf32>
      %115 = vector.broadcast %96 : vector<1x256xf32> to vector<32x256xf32>
      %116 = arith.addf %114, %115 : vector<32x256xf32>
      %c0_49 = arith.constant 0 : index
      %c0_50 = arith.constant 0 : index
      %117 = vector.load %arg14[%c0_49, %c0_50] : memref<32x256xf32, #tpu.memory_space<vmem>>, vector<32x256xf32>
      tpu.vector_store %arg14[%c0_49, %c0_50], %116 {strides = array<i32>} : memref<32x256xf32, #tpu.memory_space<vmem>>, vector<32x256xf32>,
    } else {
    }
    return
  }
  func.func @transform_0(%arg0: i32, %arg1: i32) -> (i32, i32) {
    %c0_i32 = arith.constant 0 : i32
    %c0_i32_0 = arith.constant 0 : i32
    %c0_i32_1 = arith.constant 0 : i32
    return %c0_i32, %c0_i32_0 : i32, i32
  }
  func.func @transform_1(%arg0: i32, %arg1: i32) -> (i32, i32) {
    %c0_i32 = arith.constant 0 : i32
    %c0_i32_0 = arith.constant 0 : i32
    return %arg0, %c0_i32 : i32, i32
  }
  func.func @transform_2(%arg0: i32, %arg1: i32) -> (i32, i32) {
    %c0_i32 = arith.constant 0 : i32
    %c0_i32_0 = arith.constant 0 : i32
    return %c0_i32, %arg1 : i32, i32
  }
  func.func @transform_3(%arg0: i32, %arg1: i32) -> (i32, i32) {
    %c0_i32 = arith.constant 0 : i32
    %c0_i32_0 = arith.constant 0 : i32
    return %c0_i32, %arg1 : i32, i32
  }
  func.func @transform_4(%arg0: i32, %arg1: i32) -> (i32, i32) {
    %c0_i32 = arith.constant 0 : i32
    %c0_i32_0 = arith.constant 0 : i32
    return %c0_i32, %arg1 : i32, i32
  }
  func.func @transform_5(%arg0: i32, %arg1: i32) -> (i32, i32) {
    %c0_i32 = arith.constant 0 : i32
    %c0_i32_0 = arith.constant 0 : i32
    return %c0_i32, %arg1 : i32, i32
  }
  func.func @transform_6(%arg0: i32, %arg1: i32) -> (i32, i32) {
    %c0_i32 = arith.constant 0 : i32
    %c0_i32_0 = arith.constant 0 : i32
    return %c0_i32, %arg1 : i32, i32
  }
  func.func @transform_7(%arg0: i32, %arg1: i32) -> (i32, i32) {
    %c0_i32 = arith.constant 0 : i32
    %c0_i32_0 = arith.constant 0 : i32
    return %c0_i32, %arg1 : i32, i32
  }
  func.func @transform_8(%arg0: i32, %arg1: i32) -> (i32, i32) {
    %c0_i32 = arith.constant 0 : i32
    %c0_i32_0 = arith.constant 0 : i32
    return %arg1, %c0_i32 : i32, i32
  }
  func.func @transform_9(%arg0: i32, %arg1: i32) -> (i32, i32) {
    %c0_i32 = arith.constant 0 : i32
    %c0_i32_0 = arith.constant 0 : i32
    %c0_i32_1 = arith.constant 0 : i32
    return %c0_i32, %c0_i32_0 : i32, i32
  }
  func.func @transform_10(%arg0: i32, %arg1: i32) -> (i32, i32) {
    %c0_i32 = arith.constant 0 : i32
    %c0_i32_0 = arith.constant 0 : i32
    %c0_i32_1 = arith.constant 0 : i32
    return %c0_i32, %c0_i32_0 : i32, i32
  }
  func.func @transform_11(%arg0: i32, %arg1: i32) -> (i32, i32) {
    %c0_i32 = arith.constant 0 : i32
    %c0_i32_0 = arith.constant 0 : i32
    %c0_i32_1 = arith.constant 0 : i32
    return %c0_i32, %c0_i32_0 : i32, i32
  }
  func.func @transform_12(%arg0: i32, %arg1: i32) -> (i32, i32) {
    %c0_i32 = arith.constant 0 : i32
    %c0_i32_0 = arith.constant 0 : i32
    return %arg0, %c0_i32 : i32, i32
  }
}

</mosaic_0001>

<bundles_post_ra>
// kernel: tpu_custom_call.1
= control target key start
LH: loop header
LB: loop body
LE: loop exit
PB: predicated region body
PF: predicated region fallthrough
CT: control target
= control target key end

     0   :  { %s3538_s0 = inlined_call_operand.hbm [shape: f32[32,256], index: 0, kind: input, shape index: {}]   ;;  %s3539_s1 = inlined_call_operand.hbm [shape: bf16[32,256], index: 1, kind: input, shape index: {}]   ;;  %s3540_s2 = inlined_call_operand.hbm [shape: bf16[256,256], index: 2, kind: input, shape index: {}]   ;;  %s3541_s3 = inlined_call_operand.vmem [shape: f32[1,256], index: 3, kind: input, shape index: {}]   ;;  %s3542_s4 = inlined_call_operand.hbm [shape: bf16[256,256], index: 4, kind: input, shape index: {}]   ;;  %s3543_s5 = inlined_call_operand.vmem [shape: f32[1,256], index: 5, kind: input, shape index: {}]   ;;  %s3544_s6 = inlined_call_operand.hbm [shape: bf16[256,256], index: 6, kind: input, shape index: {}]   ;;  %s3545_s7 = inlined_call_operand.vmem [shape: f32[1,256], index: 7, kind: input, shape index: {}]   ;;  %s3546_s8 = inlined_call_operand.hbm [shape: bf16[256,256], index: 8, kind: input, shape index: {}]   ;;  %s3547_s9 = inlined_call_operand.vmem [shape: f32[1,256], index: 9, kind: input, shape index: {}]   ;;  %s3548_s10 = inlined_call_operand.hbm [shape: f32[1,256], index: 10, kind: input, shape index: {}]   ;;  %s3549_s11 = inlined_call_operand.vmem [shape: f32[1,256], index: 11, kind: input, shape index: {}]   ;;  %s3550_s12 = inlined_call_operand.hbm [shape: f32[32,256], index: 12, kind: output, shape index: {}]  }
   0x1   :  { %3554 = sst [smem:[#allocation23_spill]] %s3538_s0 }
   0x2   :  { %3555 = sst [smem:[#allocation24_spill]] %s3539_s1 }
   0x3   :  { %3556 = sst [smem:[#allocation25_spill]] %s3540_s2 }
   0x4   :  { %3557 = sst [smem:[#allocation26_spill]] %s3542_s4 }
   0x5   :  { %3558 = sst [smem:[#allocation27_spill]] %s3543_s5 }
   0x6   :  { %3559 = sst [smem:[#allocation28_spill]] %s3544_s6 }
   0x7   :  { %3560 = sst [smem:[#allocation29_spill]] %s3545_s7 }
   0x8   :  { %3561 = sst [smem:[#allocation30_spill]] %s3547_s9 }
   0x9   :  { %3562 = sst [smem:[#allocation31_spill]] %s3549_s11 }
   0xa   :  { %3563 = sst [smem:[#allocation32_spill]] %s3550_s12 }
   0xb   :  { %17 = vsyncpa [#allocation4], 0 }
   0xc   :  { %18 = vsyncpa [#allocation7], 0 }
   0xd   :  { %19 = vsyncpa [#allocation5], 0  ;;  %s3064_s21 = smov 0   ;;  %s3066_s22 = smov 0  }
   0xe   :  { %s3068_s23 = smov 0   ;;  %s3070_s24 = smov 0  }
   0xf   :  { %s3072_s25 = smov 0   ;;  %s3074_s26 = smov 0  }
  0x10 LB: > { %3564 = sst [smem:[#allocation19_spill]] %s2970_s23  ;;  %s3093_s27 = sadd.s32 4294967295, %s2982_s26   ;;  %s2982_s26 = sphi %s3074_s26, %s25_s26   ;;  %s2978_s25 = sphi %s3072_s25, %s3593_s25   ;;  %s2974_s24 = sphi %s3070_s24, %s3592_s24   ;;  %s2970_s23 = sphi %s3068_s23, %s3588_s23   ;;  %s2966_s22 = sphi %s3066_s22, %s3591_s22   ;;  %s2962_s21 = sphi %s3064_s21, %s3590_s21  }
  0x11   : > { %3565 = sst [smem:[#allocation20_spill]] %s2982_s26  ;;  %p98_p0 = scmp.ne.s32.totalorder %s2970_s23, %s2966_s22 }
  0x12   : > { %p99_p1 = scmp.eq.s32.totalorder %s2982_s26, 0  ;;  %p104_p2 = scmp.ne.s32.totalorder %s2966_s22, %s2962_s21 }
  0x13   : > { %p105_p3 = scmp.eq.s32.totalorder %s3093_s27, 0  ;;  %p2133_p5 = scmp.ge.s32.totalorder %s2982_s26, 1 }
  0x14   : > { %p3101_p4 = por %p99_p1, %p98_p0  ;;  %p360_p7 = scmp.lt.s32.totalorder %s2982_s26, 3 }
  0x15   : > { %p3108_p6 = por %p105_p3, %p104_p2  ;;  %s3568_s0 = sld [smem:[#allocation23_spill]] }
  0x16   : > { %p3116_p8 = pnand %p2133_p5, %p360_p7  ;;  %s2984_s17 = smov [#allocation3]  }
  0x17   : > { %s373_s18 = sshll.u32 %s2984_s17, 4  ;;  %p2564_p11 = scmp.lt.s32.totalorder %s2982_s26, 2  ;;  %s374_s18 = int_to_ptr.vmem [resolvable:$true] %s373_s18 }
  0x18   : > { %p2538_p9 = pneg %p3116_p8  ;;  %s2985_s20 = smov 256  }
  0x19   : > { %s2986_s21 = smov 16   ;;  %p3133_p12 = pnand %p2564_p11, %p3101_p4 }
  0x1a   : > { %p3124_p10 = pnand %p2538_p9, %p105_p3  ;;  %s34_s14 = sadd.s32 1, %s2978_s25 }
  0x1b   : > { %s371_s15 = sshll.u32 %s3568_s0, 4  ;;  %p35_p13 = scmp.ge.s32.totalorder %s34_s14, 2  ;;  %s372_s15 = int_to_ptr.hbm [resolvable:$true] %s371_s15 }
  0x1c   : > { %2541 = dma.hbm_to_vmem [thread:$0]  (!%p3124_p10), %s372_s15, 1024, %s374_s18, [#allocation4], %s2985_s20, %s2985_s20, %s2986_s21  }
  0x1d   : > { %s423_s17 = sand.u32 1, %s2982_s26   ;;  %s3595_s14 = smov (%p35_p13, %s34_s14), 0 }
  0x1e   : > { %3572 = sst [smem:[#allocation21_spill]] %s3595_s14  ;;  %s425_s28 = sand.u32 1, %s2970_s23  }
  0x1f   : > { %s88_s0 = ssub.s32 %s2978_s25, %s3595_s14  ;;  %s3144_s12 = sshll.u32 %s425_s28, 7 }
  0x20   : > { %p89_p0 = scmp.eq.s32.totalorder %s88_s0, 0  ;;  %s3147_s15 = sshll.u32 %s2978_s25, 2 }
  0x21   : > { %s427_s29 = scalar_lea.vmem [#allocation8], %s3144_s12  ;;  %s3573_s20 = sadd.s32 1, %s2970_s23 }
  0x22   : > { %s434_s18 = sshll.u32 %s427_s29, 4  ;;  %s3575_s2 = sld [smem:[#allocation25_spill]]  ;;  %s435_s18 = int_to_ptr.vmem [resolvable:$true] %s434_s18 }
  0x23   : > { %s3153_s21 = scalar_select %p89_p0, %s2970_s23, %s3573_s20  }
  0x24   : > { %s3159_s14 = scalar_lea.sflag [#allocation4], %s423_s17  ;;  %s2987_s0 = smov 128  }
  0x25   : > { %3574 = sst [smem:[#allocation22_spill]] %s3153_s21  ;;  %s2988_s7 = smov 64  }
  0x26   : > { %s2989_s5 = smov 4   ;;  %s3576_s4 = sld [smem:[#allocation26_spill]] }
  0x27   : > { %s3577_s1 = sld [smem:[#allocation24_spill]]  ;;  %s2991_s29 = smov 8  }
  0x28   : > { %s431_s9 = scalar_lea.hbm %s3575_s2, %s3147_s15  ;;  %s3578_s6 = sld [smem:[#allocation28_spill]] }
  0x29   : > { %s432_s28 = sshll.u32 %s431_s9, 4  ;;  %s454_s9 = scalar_lea.vmem [#allocation9], %s3144_s12  ;;  %s433_s28 = int_to_ptr.hbm [resolvable:$true] %s432_s28 }
  0x2a   : > { %2551 = dma.hbm_to_vmem [thread:$0]  (!%p3133_p12), %s433_s28, 2048, %s435_s18, %s3159_s14, %s2987_s0, %s2988_s7, %s2989_s5  }
  0x2b   : > { %s461_s2 = sshll.u32 %s454_s9, 4  ;;  %s2990_s18 = smov [#allocation6]   ;;  %s462_s2 = int_to_ptr.vmem [resolvable:$true] %s461_s2 }
  0x2c   : > { %s458_s11 = scalar_lea.hbm %s3576_s4, %s3147_s15  ;;  %s391_s28 = sshll.u32 %s2990_s18, 4  ;;  %s392_s28 = int_to_ptr.vmem [resolvable:$true] %s391_s28 }
  0x2d   : > { %s459_s26 = sshll.u32 %s458_s11, 4  ;;  %s389_s23 = sshll.u32 %s3577_s1, 4  ;;  %s460_s26 = int_to_ptr.hbm [resolvable:$true] %s459_s26  ;;  %s390_s23 = int_to_ptr.hbm [resolvable:$true] %s389_s23 }
  0x2e   : > { %2554 = dma.hbm_to_vmem [thread:$0]  (!%p3133_p12), %s460_s26, 2048, %s462_s2, %s3159_s14, %s2987_s0, %s2988_s7, %s2989_s5  }
  0x2f   : > { %2544 = dma.hbm_to_vmem [thread:$0]  (!%p3124_p10), %s390_s23, 512, %s392_s28, [#allocation7], %s2987_s0, %s2987_s0, %s2991_s29  }
  0x30   : > { %s485_s2 = scalar_lea.hbm %s3578_s6, %s3147_s15  ;;  %s481_s9 = scalar_lea.vmem [#allocation10], %s3144_s12 }
  0x31   : > { %s486_s26 = sshll.u32 %s485_s2, 4  ;;  %s488_s21 = sshll.u32 %s481_s9, 4  ;;  %s487_s26 = int_to_ptr.hbm [resolvable:$true] %s486_s26  ;;  %s489_s21 = int_to_ptr.vmem [resolvable:$true] %s488_s21 }
  0x32   : > { %2557 = dma.hbm_to_vmem [thread:$0]  (!%p3133_p12), %s487_s26, 2048, %s489_s21, %s3159_s14, %s2987_s0, %s2988_s7, %s2989_s5  }
  0x33   : > { %s407_s1 = sshll.u32 %s3548_s10, 4  ;;  %s2992_s23 = smov [#allocation12]   ;;  %s408_s1 = int_to_ptr.hbm [resolvable:$true] %s407_s1 }
  0x34   : > { %s409_s28 = sshll.u32 %s2992_s23, 4  ;;  %s2445_s15 = sshll.u32 %s2978_s25, 7  ;;  %s410_s28 = int_to_ptr.vmem [resolvable:$true] %s409_s28 }
  0x35   : > { %2547 = dma.hbm_to_vmem [thread:$0]  (!%p3124_p10), %s408_s1, 32, %s410_s28, [#allocation7]  }
  0x36   : > { %s508_s20 = scalar_lea.vmem [#allocation11], %s3144_s12  ;;  %s514_s4 = scalar_lea.hbm %s3546_s8, %s2445_s15 }
  0x37   : > { %s517_s11 = sshll.u32 %s508_s20, 4  ;;  %s515_s6 = sshll.u32 %s514_s4, 4  ;;  %s518_s11 = int_to_ptr.vmem [resolvable:$true] %s517_s11  ;;  %s516_s6 = int_to_ptr.hbm [resolvable:$true] %s515_s6 }
  0x38   : > { %2560 = dma.hbm_to_vmem [thread:$0]  (!%p3133_p12), %s516_s6, 2048, %s518_s11, %s3159_s14, %s2987_s0, %s2987_s0, %s2991_s29  }
  0x39   : > { %529 = sbr.rel (%p3116_p8) target bundleno = 1690 (0x69a), region = 68 }
  0x3e   : > { %2941 = dma.done.wait (%p105_p3), [#allocation4], 1024  }
  0x3f   : > { %2943 = vsyncadd (%p105_p3), [#allocation4], 4294966272 }
  0x40   : > { %2945 = dma.done.wait (%p105_p3), [#allocation7], 512  }
  0x41   : > { %2947 = vsyncadd (%p105_p3), [#allocation7], 4294966784  ;;  %s541_s1 = sand.u32 1, %s3093_s27   ;;  %s543_s4 = sand.u32 1, %s2966_s22  }
  0x42   : > { %s2151_s5 = sshll.u32 %s543_s4, 7  ;;  %s542_s6 = scalar_lea.sflag [#allocation4], %s541_s1 }
  0x43   : > { %s3217_s7 = scalar_lea.vmem [#allocation8], %s2151_s5 }
  0x44   : > { %2949 = dma.done.wait (%p3108_p6), %s542_s6, 8192  }
  0x45   : > { %2951 = vsyncadd (%p3108_p6), %s542_s6, 4294959104  ;;  %s3223_s12 = scalar_lea.vmem [#allocation9], %s2151_s5  ;;  %s3225_s16 = scalar_lea.vmem [#allocation10], %s2151_s5 }
  0x46   : > { %s3227_s19 = scalar_lea.vmem [#allocation11], %s2151_s5 }
  0x47   : > { %2953 = dma.done.wait (%p105_p3), [#allocation7], 32  }
  0x48   : > { %2955 = vsyncadd (%p105_p3), [#allocation7], 4294967264  ;;  %p642_p1 = scmp.lt.s32.totalorder %s2974_s24, 1  ;;  %s3579_s21 = sld [smem:[#allocation27_spill]] }
  0x49   : > { %s3580_s28 = sld [smem:[#allocation29_spill]]  ;;  %p2156_p2 = scmp.ne.s32.totalorder %s2974_s24, 0 }
  0x4a   : > { %s3235_s13 = scalar_select %p642_p1, %s2974_s24, 1 }
  0x4b   : > { %657 = sbr.rel (%p2156_p2) target bundleno = 89 (0x59), region = 100 }
  0x4c   : > { %s644_s0 = scalar_lea.vmem %s3541_s3, %s3235_s13 }
  0x4e   : > { %s647_s17 = scalar_lea.vmem %s3579_s21, %s3235_s13 }
  0x4f   : > { %s650_s15 = scalar_lea.vmem %s3580_s28, %s3235_s13 }
  0x50   : > { %v2993_v0 = vmov 0.0  }
  0x51   : > { %658 = vst [vmem:[#allocation2 + $0x30] sm:$0xff] %v2993_v0 }
  0x52   : > { %659 = vst [vmem:[#allocation2] sm:$0xff] %v2993_v0 }
  0x53   : > { %660 = vst [vmem:[#allocation2 + $0x18] sm:$0xff] %v2993_v0 }
  0x54   : > { %661 = vst [vmem:[#allocation2 + $0x10] sm:$0xff] %v2993_v0 }
  0x55   : > { %662 = vst [vmem:[#allocation2 + $0x8] sm:$0xff] %v2993_v0 }
  0x56   : > { %663 = vst [vmem:[#allocation2 + $0x20] sm:$0xff] %v2993_v0 }
  0x57   : > { %664 = vst [vmem:[#allocation2 + $0x28] sm:$0xff] %v2993_v0 }
  0x58   : > { %665 = vst [vmem:[#allocation2 + $0x38] sm:$0xff] %v2993_v0 }
  0x59 PF: > { %v2457_v1 = vld [vmem:[%s3217_s7 + $0x38] sm:$0xff]  ;;  %v2456_v3 = vld [vmem:[%s3217_s7 + $0x30] sm:$0xff]  ;;  %v2455_v5 = vld [vmem:[%s3217_s7 + $0x28] sm:$0xff]  ;;  %vm1339_vm1 = vcmask 1043456   ;;  %vm1287_vm3 = vcmask 64512   ;;  %p2439_p3 = scmp.ne.s32.totalorder %s2974_s24, 1 }
  0x5a   : > { %v2465_v2 = vld [vmem:[%s3217_s7 + $0x78] sm:$0xff]  ;;  %814 = vmatpush.bf16.msra.mxu2 %v2457_v1  ;;  %v2464_v4 = vld [vmem:[%s3217_s7 + $0x70] sm:$0xff]  ;;  %v2463_v6 = vld [vmem:[%s3217_s7 + $0x68] sm:$0xff]  ;;  %s3584_s13 = sld [smem:[#allocation31_spill]] (!%p2439_p3) }
  0x5b   : > { %833 = vmatpush.bf16.msra.mxu3 %v2465_v2  ;;  %v2489_v7 = vld [vmem:[%s3225_s16 + $0x38] sm:$0xff]  ;;  %v2454_v9 = vld [vmem:[%s3217_s7 + $0x20] sm:$0xff]  ;;  %v2488_v11 = vld [vmem:[%s3225_s16 + $0x30] sm:$0xff] }
  0x5c   : > { %v2497_v8 = vld [vmem:[%s3225_s16 + $0x78] sm:$0xff]  ;;  %v2462_v10 = vld [vmem:[%s3217_s7 + $0x60] sm:$0xff]  ;;  %1174 = vmatpush.bf16.msra.mxu0 %v2489_v7  ;;  %v2496_v12 = vld [vmem:[%s3225_s16 + $0x70] sm:$0xff] }
  0x5d   : > { %1193 = vmatpush.bf16.msra.mxu1 %v2497_v8  ;;  %v2453_v13 = vld [vmem:[%s3217_s7 + $0x18] sm:$0xff]  ;;  %v2487_v15 = vld [vmem:[%s3225_s16 + $0x28] sm:$0xff]  ;;  %v2452_v17 = vld [vmem:[%s3217_s7 + $0x10] sm:$0xff] }
  0x5e   : > { %815 = vmatpush.bf16.msra.mxu2 %v2456_v3  ;;  %v2461_v14 = vld [vmem:[%s3217_s7 + $0x58] sm:$0xff]  ;;  %v2495_v16 = vld [vmem:[%s3225_s16 + $0x68] sm:$0xff]  ;;  %v2460_v18 = vld [vmem:[%s3217_s7 + $0x50] sm:$0xff] }
  0x5f   : > { %834 = vmatpush.bf16.msra.mxu3 %v2464_v4  ;;  %v2486_v19 = vld [vmem:[%s3225_s16 + $0x20] sm:$0xff]  ;;  %v2451_v21 = vld [vmem:[%s3217_s7 + $0x8] sm:$0xff]  ;;  %v2485_v23 = vld [vmem:[%s3225_s16 + $0x18] sm:$0xff] }
  0x60   : > { %1175 = vmatpush.bf16.msra.mxu0 %v2488_v11  ;;  %v2494_v20 = vld [vmem:[%s3225_s16 + $0x60] sm:$0xff]  ;;  %v2459_v22 = vld [vmem:[%s3217_s7 + $0x48] sm:$0xff]  ;;  %v2493_v24 = vld [vmem:[%s3225_s16 + $0x58] sm:$0xff]  ;;  %v2994_v11 = vmov 0.0  }
  0x61   : > { %1194 = vmatpush.bf16.msra.mxu1 %v2496_v12  ;;  %v2450_v25 = vld [vmem:[%s3217_s7] sm:$0xff]  ;;  %v3278_v28 = vld [vmem:[#allocation3 + $0x10] sm:$0xff]  ;;  %v3280_v29 = vld [vmem:[#allocation3 + $0x8] sm:$0xff] }
  0x62   : > { %816 = vmatpush.bf16.msra.mxu2 %v2455_v5  ;;  %v2458_v26 = vld [vmem:[%s3217_s7 + $0x40] sm:$0xff]  ;;  %v3282_v30 = vld [vmem:[#allocation3 + $0x18] sm:$0xff]  ;;  %v2484_v33 = vld [vmem:[%s3225_s16 + $0x10] sm:$0xff] }
  0x63   : > { %835 = vmatpush.bf16.msra.mxu3 %v2463_v6  ;;  %v3276_v27 = vld [vmem:[#allocation3] sm:$0xff]  ;;  %v2473_v31 = vld [vmem:[%s3223_s12 + $0x38] sm:$0xff]  ;;  %v2492_v34 = vld [vmem:[%s3225_s16 + $0x50] sm:$0xff]  ;;  %v679_v36 = vpack.c.bf16 %v3282_v30, %v3280_v29 }
  0x64   : > { %1176 = vmatpush.bf16.msra.mxu0 %v2487_v15  ;;  %v2481_v32 = vld [vmem:[%s3223_s12 + $0x78] sm:$0xff]  ;;  %v678_v35 = vpack.c.bf16 %v3278_v28, %v3276_v27  ;;  %v2472_v37 = vld [vmem:[%s3223_s12 + $0x30] sm:$0xff]  ;;  %v2483_v39 = vld [vmem:[%s3225_s16 + $0x8] sm:$0xff] }
  0x65   : > { %1195 = vmatpush.bf16.msra.mxu1 %v2495_v16  ;;  %v2480_v38 = vld [vmem:[%s3223_s12 + $0x70] sm:$0xff]  ;;  %v2491_v40 = vld [vmem:[%s3225_s16 + $0x48] sm:$0xff]  ;;  %v2482_v43 = vld [vmem:[%s3225_s16] sm:$0xff] }
  0x66   : > { %817 = vmatpush.bf16.msra.mxu2 %v2454_v9  ;;  %v2471_v41 = vld [vmem:[%s3223_s12 + $0x28] sm:$0xff]  ;;  %v2490_v44 = vld [vmem:[%s3225_s16 + $0x40] sm:$0xff]  ;;  %v3304_v52 = vld [vmem:[#allocation3 + $0x30] sm:$0xff]  ;;  %v1220_v9 = vlaneseq  ;;  %s3583_s16 = sld [smem:[#allocation30_spill]] (!%p2439_p3) }
  0x67   : > { %836 = vmatpush.bf16.msra.mxu3 %v2462_v10  ;;  %v2479_v42 = vld [vmem:[%s3223_s12 + $0x68] sm:$0xff]  ;;  %v2470_v45 = vld [vmem:[%s3223_s12 + $0x20] sm:$0xff]  ;;  %v3308_v54 = vld [vmem:[#allocation3 + $0x38] sm:$0xff] }
  0x68   : > { %1177 = vmatpush.bf16.msra.mxu0 %v2486_v19  ;;  %v2478_v46 = vld [vmem:[%s3223_s12 + $0x60] sm:$0xff]  ;;  %v2447_v48 = vld [vmem:[#allocation6 + $0x4] sm:$0xf0]  ;;  %v2225_v50 = vld [vmem:[#allocation6 + $0x8] sm:$0xf0]  ;;  %v1221_v10 = vand.u32 127, %v1220_v9 }
  0x69   : > { %1196 = vmatpush.bf16.msra.mxu1 %v2494_v20  ;;  %v2223_v47 = vld [vmem:[#allocation6] sm:$0xf]  ;;  %v2446_v49 = vld [vmem:[#allocation6 + $0x4] sm:$0xf]  ;;  %v3306_v53 = vld [vmem:[#allocation3 + $0x28] sm:$0xff] }
  0x6a   : > { %818 = vmatpush.bf16.msra.mxu2 %v2453_v13  ;;  %v3302_v51 = vld [vmem:[#allocation3 + $0x20] sm:$0xff]  ;;  %v2224_v55 = vor.u32 %v2447_v48, %v2223_v47  ;;  %v2228_v56 = vor.u32 %v2446_v49, %v2225_v50  ;;  %v2469_v57 = vld [vmem:[%s3223_s12 + $0x18] sm:$0xff]  ;;  %v681_v60 = vpack.c.bf16 %v3308_v54, %v3306_v53  ;;  %v2468_v61 = vld [vmem:[%s3223_s12 + $0x10] sm:$0xff]  ;;  %vm1417_vm0 = vcmp.ge.s32.totalorder %v1221_v10, 64 }
  0x6b   : > { %837 = vmatpush.bf16.msra.mxu3 %v2461_v14  ;;  %v2477_v58 = vld [vmem:[%s3223_s12 + $0x58] sm:$0xff]  ;;  %v680_v59 = vpack.c.bf16 %v3304_v52, %v3302_v51  ;;  %v2476_v62 = vld [vmem:[%s3223_s12 + $0x50] sm:$0xff]  ;;  %v2467_v63 = vld [vmem:[%s3223_s12 + $0x8] sm:$0xff]  ;;  %v3322_v12 = vsel %vm1417_vm0, 1.0, %v2994_v11  ;;  %vm1223_vm2 = vcmp.lt.s32.totalorder %v1221_v10, 64 }
  0x6c   : > { %1178 = vmatpush.bf16.msra.mxu0 %v2485_v23  ;;  %v2475_v0 = vld [vmem:[%s3223_s12 + $0x48] sm:$0xff]  ;;  %v2466_v1 = vld [vmem:[%s3223_s12] sm:$0xff]  ;;  %v2231_v3 = vld [vmem:[#allocation6 + $0x10] sm:$0xf]  ;;  %v3349_v47 = vsel %vm1223_vm2, 1.0, %v2994_v11 }
  0x6d   : > { %1197 = vmatpush.bf16.msra.mxu1 %v2493_v24  ;;  %v2474_v2 = vld [vmem:[%s3223_s12 + $0x40] sm:$0xff]  ;;  %v2449_v4 = vld [vmem:[#allocation6 + $0x14] sm:$0xf0]  ;;  %v2448_v5 = vld [vmem:[#allocation6 + $0x14] sm:$0xf] }
  0x6e   : > { %819 = vmatpush.bf16.msra.mxu2 %v2452_v17  ;;  %v2233_v6 = vld [vmem:[#allocation6 + $0x18] sm:$0xf0]  ;;  %v2232_v7 = vor.u32 %v2449_v4, %v2231_v3  ;;  %v2634_v15 = vld [vmem:[%s650_s15] ss:$0 sm:$0xff] }
  0x6f   : > { %838 = vmatpush.bf16.msra.mxu3 %v2460_v18  ;;  %v2236_v8 = vor.u32 %v2448_v5, %v2233_v6 }
  0x70   : > { %1179 = vmatpush.bf16.msra.mxu0 %v2484_v33 }
  0x71   : > { %1198 = vmatpush.bf16.msra.mxu1 %v2492_v34 }
  0x72   : > { %820 = vmatpush.bf16.msra.mxu2 %v2451_v21 }
  0x73   : > { %839 = vmatpush.bf16.msra.mxu3 %v2459_v22 }
  0x74   : > { %1180 = vmatpush.bf16.msra.mxu0 %v2483_v39  ;;  %v2635_v39 = vld [vmem:[%s647_s17] ss:$0 sm:$0xff] }
  0x75   : > { %1199 = vmatpush.bf16.msra.mxu1 %v2491_v40 }
  0x76   : > { %821 = vmatpush.bf16.msra.mxu2 %v2450_v25 }
  0x77   : > { %840 = vmatpush.bf16.msra.mxu3 %v2458_v26 }
  0x78   : > { %1181 = vmatpush.bf16.msra.mxu0 %v2482_v43 }
  0x79   : > { %822 = vmatmul.bf16.vlgmr.msra.gmra.mxu2 %v678_v35  ;;  %1200 = vmatpush.bf16.msra.mxu1 %v2490_v44 }
  0x7a   : > { %1004 = vmatpush.bf16.msrb.mxu2 %v2473_v31  ;;  %841 = vmatmul.bf16.vlgmr.msra.gmra.mxu3 %v679_v36 }
  0x7b   : > { %1023 = vmatpush.bf16.msrb.mxu3 %v2481_v32  ;;  %1182 = vmatmul.bf16.vlgmr.msra.gmra.mxu0 %v2224_v55 }
  0x7c   : > { %1201 = vmatmul.bf16.vlgmr.msra.gmra.mxu1 %v2228_v56 }
  0x7e   : > { %1005 = vmatpush.bf16.msrb.mxu2 %v2472_v37 }
  0x7f   : > { %1024 = vmatpush.bf16.msrb.mxu3 %v2480_v38  ;;  %v2633_v38 = vld [vmem:[%s644_s0] ss:$0 sm:$0xff] }
  0x82   : > { %1006 = vmatpush.bf16.msrb.mxu2 %v2471_v41 }
  0x83   : > { %1025 = vmatpush.bf16.msrb.mxu3 %v2479_v42 }
  0x86   : > { %1007 = vmatpush.bf16.msrb.mxu2 %v2470_v45 }
  0x87   : > { %1026 = vmatpush.bf16.msrb.mxu3 %v2478_v46 }
  0x89   : > { %827 = vmatmul.bf16.gmra.mxu2 %v680_v59 }
  0x8a   : > { %1008 = vmatpush.bf16.msrb.mxu2 %v2469_v57  ;;  %846 = vmatmul.bf16.gmra.mxu3 %v681_v60 }
  0x8b   : > { %1027 = vmatpush.bf16.msrb.mxu3 %v2477_v58  ;;  %1187 = vmatmul.bf16.gmra.mxu0 %v2232_v7 }
  0x8c   : > { %1206 = vmatmul.bf16.gmra.mxu1 %v2236_v8 }
  0x8e   : > { %1009 = vmatpush.bf16.msrb.mxu2 %v2468_v61 }
  0x8f   : > { %1028 = vmatpush.bf16.msrb.mxu3 %v2476_v62 }
  0x92   : > { %1010 = vmatpush.bf16.msrb.mxu2 %v2467_v63 }
  0x93   : > { %1029 = vmatpush.bf16.msrb.mxu3 %v2475_v0 }
  0x96   : > { %1011 = vmatpush.bf16.msrb.mxu2 %v2466_v1 }
  0x97   : > { %1030 = vmatpush.bf16.msrb.mxu3 %v2474_v2 }
  0x99   : > { %1012 = vmatmul.bf16.vlgmr.msrb.gmra.mxu2 %v2224_v55 }
  0x9a   : > { %1031 = vmatmul.bf16.vlgmr.msrb.gmra.mxu3 %v2228_v56 }
  0xa9   : > { %1017 = vmatmul.bf16.gmra.mxu2 %v2232_v7 }
  0xaa   : > { %1036 = vmatmul.bf16.gmra.mxu3 %v2236_v8 }
  0xf8   : > { %v1183_v16 = vpop.f32.mrf.mxu0 }
  0xf9   : > { %v1202_v17 = vpop.f32.mrf.mxu1  ;;  %v1184_v18 = vadd.f32 %v2634_v15, %v1183_v16 }
  0xfb   : > { %v1203_v21 = vadd.f32 %v1202_v17, %v1184_v18 }
  0xfc   : > { %v823_v13 = vpop.f32.mrf.mxu2 }
  0xfd   : > { %v842_v14 = vpop.f32.mrf.mxu3  ;;  %v1216_v22 = vpack.c.bf16 %v1203_v21, %v1203_v21  ;;  %v824_v40 = vadd.f32 %v2633_v38, %v823_v13 }
  0xff   : > { %v3330_v23 = vsel %vm1339_vm1, %v1216_v22, 0  ;;  %v3347_v45 = vadd.f32 %v842_v14, %v824_v40 }
 0x100   : > { %v1185_v24 = vpop.f32.mrf.mxu0  ;;  %1350 = vmatpush.bf16.msrb.mxu0 %v3330_v23 }
 0x101   : > { %v1204_v25 = vpop.f32.mrf.mxu1  ;;  %v1186_v26 = vadd.f32 %v2634_v15, %v1185_v24  ;;  %v1227_v50 = vmul.f32 %v3349_v47, %v3347_v45 }
 0x103   : > { %v1205_v33 = vadd.f32 %v1204_v25, %v1186_v26  ;;  %v1231_v61 = vpack.c.bf16 %v1227_v50, %v1227_v50 }
 0x104   : > { %v825_v19 = vpop.f32.mrf.mxu2 }
 0x105   : > { %v844_v20 = vpop.f32.mrf.mxu3  ;;  %v1217_v34 = vpack.c.bf16 %v1205_v33, %v1205_v33  ;;  %v826_v55 = vadd.f32 %v2633_v38, %v825_v19 }
 0x107   : > { %v3334_v35 = vsel %vm1339_vm1, %v1217_v34, 0  ;;  %v3353_v62 = vadd.f32 %v844_v20, %v826_v55 }
 0x108   : > { %1369 = vmatpush.bf16.msrb.mxu1 %v3334_v35  ;;  %v1188_v46 = vpop.f32.mrf.mxu0 }
 0x109   : > { %v1207_v49 = vpop.f32.mrf.mxu1  ;;  %v1189_v59 = vadd.f32 %v2634_v15, %v1188_v46  ;;  %v1228_v2 = vmul.f32 %v3349_v47, %v3353_v62 }
 0x10b   : > { %v1208_v0 = vadd.f32 %v1207_v49, %v1189_v59  ;;  %v1232_v11 = vpack.c.bf16 %v1228_v2, %v1228_v2 }
 0x10c   : > { %v828_v31 = vpop.f32.mrf.mxu2 }
 0x10d   : > { %v847_v32 = vpop.f32.mrf.mxu3  ;;  %v829_v3 = vadd.f32 %v2633_v38, %v828_v31  ;;  %v1218_v7 = vpack.c.bf16 %v1208_v0, %v1208_v0 }
 0x10f   : > { %v3357_v13 = vadd.f32 %v847_v32, %v829_v3  ;;  %v3360_v16 = vsel %vm1339_vm1, %v1218_v7, 0 }
 0x110   : > { %v1190_v1 = vpop.f32.mrf.mxu0 }
 0x111   : > { %v1191_v8 = vadd.f32 %v2634_v15, %v1190_v1  ;;  %v1209_v9 = vpop.f32.mrf.mxu1  ;;  %v1229_v18 = vmul.f32 %v3349_v47, %v3357_v13 }
 0x113   : > { %v1210_v17 = vadd.f32 %v1209_v9, %v1191_v8  ;;  %v1233_v25 = vpack.c.bf16 %v1229_v18, %v1229_v18 }
 0x114   : > { %v830_v36 = vpop.f32.mrf.mxu2 }
 0x115   : > { %v849_v37 = vpop.f32.mrf.mxu3  ;;  %v831_v19 = vadd.f32 %v2633_v38, %v830_v36  ;;  %v1219_v21 = vpack.c.bf16 %v1210_v17, %v1210_v17 }
 0x117   : > { %v3365_v26 = vadd.f32 %v849_v37, %v831_v19  ;;  %v3368_v32 = vsel %vm1339_vm1, %v1219_v21, 0 }
 0x119   : > { %v1230_v33 = vmul.f32 %v3349_v47, %v3365_v26 }
 0x11b   : > { %v1234_v34 = vpack.c.bf16 %v1230_v33, %v1230_v33 }
 0x11c   : > { %v1013_v41 = vpop.f32.mrf.mxu2 }
 0x11d   : > { %v1032_v42 = vpop.f32.mrf.mxu3  ;;  %v1014_v43 = vadd.f32 %v2635_v39, %v1013_v41 }
 0x11f   : > { %v1033_v44 = vadd.f32 %v1032_v42, %v1014_v43 }
 0x121   : > { %v1212_v48 = vpack.c.bf16 %v1033_v44, %v1033_v44 }
 0x123   : > { %1242 = vmatpush.bf16.xpose.msra.mxu2 %v1212_v48  ;;  %1437 = vmatpush.bf16.xpose.msra.mxu0 %v1212_v48 }
 0x124   : > { %v1015_v56 = vpop.f32.mrf.mxu2 }
 0x125   : > { %v1034_v57 = vpop.f32.mrf.mxu3  ;;  %v1016_v58 = vadd.f32 %v2635_v39, %v1015_v56 }
 0x127   : > { %v1035_v60 = vadd.f32 %v1034_v57, %v1016_v58 }
 0x129   : > { %v1213_v63 = vpack.c.bf16 %v1035_v60, %v1035_v60 }
 0x12a   : > { %1243 = vmatmul.bf16.vlgmr.msra.gmra.mxu2 %v1231_v61 }
 0x12b   : > { %1255 = vmatpush.bf16.xpose.msra.mxu3 %v1213_v63  ;;  %1450 = vmatpush.bf16.xpose.msra.mxu1 %v1213_v63 }
 0x12c   : > { %v1018_v4 = vpop.f32.mrf.mxu2 }
 0x12d   : > { %v1037_v5 = vpop.f32.mrf.mxu3  ;;  %v1019_v6 = vadd.f32 %v2635_v39, %v1018_v4 }
 0x12f   : > { %v1038_v10 = vadd.f32 %v1037_v5, %v1019_v6 }
 0x131   : > { %v1214_v14 = vpack.c.bf16 %v1038_v10, %v1038_v10 }
 0x132   : > { %1256 = vmatmul.bf16.vlgmr.msra.gmra.mxu3 %v1232_v11 }
 0x133   : > { %1268 = vmatpush.bf16.xpose.msrb.mxu2 %v1214_v14 }
 0x134   : > { %v1020_v20 = vpop.f32.mrf.mxu2 }
 0x135   : > { %v1021_v15 = vadd.f32 %v2635_v39, %v1020_v20  ;;  %v1039_v22 = vpop.f32.mrf.mxu3 }
 0x137   : > { %v1040_v24 = vadd.f32 %v1039_v22, %v1021_v15 }
 0x139   : > { %v1215_v31 = vpack.c.bf16 %v1040_v24, %v1040_v24  ;;  %v1422_v24 = vmul.f32 %v3322_v12, %v3347_v45  ;;  %v1424_v45 = vmul.f32 %v3322_v12, %v3357_v13 }
 0x13a   : > { %1269 = vmatmul.bf16.vlgmr.msrb.gmra.mxu2 %v1233_v25 }
 0x13b   : > { %1388 = vmatpush.bf16.msra.mxu2 %v3360_v16  ;;  %1281 = vmatpush.bf16.xpose.msrb.mxu3 %v1215_v31 }
 0x13f   : > { %1463 = vmatpush.bf16.xpose.msrb.mxu2 %v1214_v14 }
 0x142   : > { %1282 = vmatmul.bf16.vlgmr.msrb.gmra.mxu3 %v1234_v34  ;;  %v1426_v34 = vpack.c.bf16 %v1422_v24, %v1422_v24 }
 0x143   : > { %1407 = vmatpush.bf16.msra.mxu3 %v3368_v32 }
 0x147   : > { %1476 = vmatpush.bf16.xpose.msrb.mxu3 %v1215_v31 }
 0x1ad   : > { %v1244_v36 = vpop.f32.mrf.mxu2 }
 0x1ae   : > { %v1288_v37 = vsel %vm1287_vm3, %v1244_v36, -inf }
 0x1af   : > { %1289 = vmax.xlane.f32.xlu0 %v1288_v37 }
 0x1b5   : > { %v1246_v38 = vpop.f32.mrf.mxu2  ;;  %v1257_v39 = vpop.f32.mrf.mxu3 }
 0x1b6   : > { %v1291_v40 = vsel %vm1287_vm3, %v1257_v39, -inf }
 0x1b7   : > { %1292 = vmax.xlane.f32.xlu0 %v1291_v40  ;;  %v1428_v40 = vpack.c.bf16 %v1424_v45, %v1424_v45  ;;  %v2425_v45 = vld [vmem:[%s3227_s19 + $0x60] sm:$0xf] }
 0x1bd   : > { %v1259_v41 = vpop.f32.mrf.mxu3  ;;  %v1270_v42 = vpop.f32.mrf.mxu2 }
 0x1be   : > { %v1294_v43 = vsel %vm1287_vm3, %v1270_v42, -inf }
 0x1bf   : > { %1295 = vmax.xlane.f32.xlu1 %v1294_v43 }
 0x1c5   : > { %v1272_v44 = vpop.f32.mrf.mxu2  ;;  %v1283_v46 = vpop.f32.mrf.mxu3 }
 0x1c6   : > { %v1297_v48 = vsel %vm1287_vm3, %v1283_v46, -inf }
 0x1c7   : > { %1298 = vmax.xlane.f32.xlu1 %v1297_v48 }
 0x1cd   : > { %v1285_v49 = vpop.f32.mrf.mxu3 }
 0x222   : > { %v1290_v50 = vpop.xlane.xlu0 %1289 }
 0x223   : > { %v1300_v55 = vsub.f32 %v1244_v36, %v1290_v50 }
 0x225   : > { %v1304_v56 = vmul.f32 1.442695, %v1300_v55 }
 0x227   : > { %2636 = vpow2.f32 %v1304_v56 }
 0x22a   : > { %v1293_v57 = vpop.xlane.xlu0 %1292 }
 0x22b   : > { %v1301_v58 = vsub.f32 %v1257_v39, %v1293_v57 }
 0x22d   : > { %v2637_v59 = vpop.eup %2636  ;;  %v1306_v60 = vmul.f32 1.442695, %v1301_v58 }
 0x22e   : > { %v1312_v61 = vsel %vm1287_vm3, %v2637_v59, 0.0 }
 0x22f   : > { %2638 = vpow2.f32 %v1306_v60  ;;  %1313 = vadd.xlane.f32.xlu2 %v1312_v61 }
 0x232   : > { %v1296_v63 = vpop.xlane.xlu1 %1295 }
 0x233   : > { %v1302_v0 = vsub.f32 %v1270_v42, %v1296_v63 }
 0x235   : > { %v2639_v1 = vpop.eup %2638  ;;  %v1308_v2 = vmul.f32 1.442695, %v1302_v0 }
 0x236   : > { %v1315_v3 = vsel %vm1287_vm3, %v2639_v1, 0.0 }
 0x237   : > { %2640 = vpow2.f32 %v1308_v2  ;;  %1316 = vadd.xlane.f32.xlu2 %v1315_v3 }
 0x23a   : > { %v1299_v4 = vpop.xlane.xlu1 %1298 }
 0x23b   : > { %v1303_v5 = vsub.f32 %v1283_v46, %v1299_v4 }
 0x23d   : > { %v2641_v6 = vpop.eup %2640  ;;  %v1310_v7 = vmul.f32 1.442695, %v1303_v5 }
 0x23e   : > { %v1318_v8 = vsel %vm1287_vm3, %v2641_v6, 0.0 }
 0x23f   : > { %2642 = vpow2.f32 %v1310_v7  ;;  %1319 = vadd.xlane.f32.xlu0 %v1318_v8 }
 0x245   : > { %v2643_v9 = vpop.eup %2642 }
 0x246   : > { %v1321_v10 = vsel %vm1287_vm3, %v2643_v9, 0.0 }
 0x247   : > { %1322 = vadd.xlane.f32.xlu1 %v1321_v10 }
 0x2a2   : > { %v1314_v11 = vpop.xlane.xlu2 %1313 }
 0x2a3   : > { %2644 = vrcp.f32 %v1314_v11 }
 0x2a9   : > { %v2645_v14 = vpop.eup %2644 }
 0x2aa   : > { %v1328_v17 = vmul.f32 %v2645_v14, %v2637_v59  ;;  %v1317_v18 = vpop.xlane.xlu2 %1316 }
 0x2ab   : > { %2646 = vrcp.f32 %v1317_v18 }
 0x2ac   : > { %v1332_v19 = vpack.c.bf16 %v1328_v17, %v1328_v17 }
 0x2ae   : > { %2366 = vmatmul.msk.bf16.vlgmr.msrb.gmra.mxu0 %vm1287_vm3, %v1332_v19 }
 0x2af   : > { %1540 = vmatpush.bf16.msrb.mxu0 %v3330_v23  ;;  %v1423_v23 = vmul.f32 %v3322_v12, %v3353_v62 }
 0x2b1   : > { %v2647_v20 = vpop.eup %2646 }
 0x2b2   : > { %v1329_v15 = vmul.f32 %v2647_v20, %v2639_v1  ;;  %v1320_v21 = vpop.xlane.xlu0 %1319 }
 0x2b3   : > { %2648 = vrcp.f32 %v1320_v21 }
 0x2b4   : > { %v1333_v22 = vpack.c.bf16 %v1329_v15, %v1329_v15 }
 0x2b6   : > { %2367 = vmatmul.msk.bf16.vlgmr.msrb.gmra.mxu1 %vm1287_vm3, %v1333_v22 }
 0x2b7   : > { %1556 = vmatpush.bf16.msrb.mxu1 %v3334_v35  ;;  %v1427_v35 = vpack.c.bf16 %v1423_v23, %v1423_v23  ;;  %v2433_v23 = vld [vmem:[%s3227_s19 + $0x70] sm:$0xf] }
 0x2b9   : > { %v2649_v25 = vpop.eup %2648 }
 0x2ba   : > { %v1330_v31 = vmul.f32 %v2649_v25, %v2641_v6  ;;  %v1323_v33 = vpop.xlane.xlu1 %1322 }
 0x2bb   : > { %2650 = vrcp.f32 %v1323_v33 }
 0x2bc   : > { %v1334_v36 = vpack.c.bf16 %v1330_v31, %v1330_v31 }
 0x2be   : > { %2368 = vmatmul.msk.bf16.vlgmr.msra.gmra.mxu2 %vm1287_vm3, %v1334_v36  ;;  %1438 = vmatmul.bf16.vlgmr.msra.gmra.mxu0 %v1426_v34 }
 0x2bf   : > { %1572 = vmatpush.bf16.msra.mxu2 %v3360_v16  ;;  %v1425_v16 = vmul.f32 %v3322_v12, %v3365_v26 }
 0x2c1   : > { %v2651_v37 = vpop.eup %2650  ;;  %v1429_v41 = vpack.c.bf16 %v1425_v16, %v1425_v16 }
 0x2c2   : > { %v1331_v38 = vmul.f32 %v2651_v37, %v2643_v9  ;;  %v2513_v37 = vld [vmem:[%s3227_s19 + $0x74] sm:$0xf0] }
 0x2c4   : > { %v1335_v39 = vpack.c.bf16 %v1331_v38, %v1331_v38  ;;  %v2512_v38 = vld [vmem:[%s3227_s19 + $0x74] sm:$0xf] }
 0x2c6   : > { %2369 = vmatmul.msk.bf16.vlgmr.msra.gmra.mxu3 %vm1287_vm3, %v1335_v39  ;;  %1451 = vmatmul.bf16.vlgmr.msra.gmra.mxu1 %v1427_v35  ;;  %v2434_v35 = vor.u32 %v2513_v37, %v2433_v23  ;;  %v2435_v39 = vld [vmem:[%s3227_s19 + $0x78] sm:$0xf0] }
 0x2c7   : > { %1588 = vmatpush.bf16.msra.mxu3 %v3368_v32  ;;  %v2438_v16 = vor.u32 %v2512_v38, %v2435_v39  ;;  %v2387_v37 = vld [vmem:[%s3227_s19 + $0x18] sm:$0xf0]  ;;  %v2499_v39 = vld [vmem:[%s3227_s19 + $0x4] sm:$0xf0] }
 0x2c8   : > { %1708 = vmatpush.bf16.msra.mxu0 %v2434_v35  ;;  %v2377_v35 = vld [vmem:[%s3227_s19] sm:$0xf] }
 0x2c9   : > { %1727 = vmatpush.bf16.msra.mxu1 %v2438_v16  ;;  %v2379_v16 = vld [vmem:[%s3227_s19 + $0x8] sm:$0xf0] }
 0x2ce   : > { %1464 = vmatmul.bf16.vlgmr.msrb.gmra.mxu2 %v1428_v40  ;;  %v2511_v40 = vld [vmem:[%s3227_s19 + $0x64] sm:$0xf0] }
 0x2d6   : > { %1477 = vmatmul.bf16.vlgmr.msrb.gmra.mxu3 %v1429_v41  ;;  %v2510_v41 = vld [vmem:[%s3227_s19 + $0x64] sm:$0xf] }
 0x32b   : > { %v3397_v62 = vpop.f32.mrf.mxu0 }
 0x333   : > { %v1354_v42 = vpop.f32.mrf.mxu0  ;;  %v3399_v43 = vpop.f32.mrf.mxu1 }
 0x334   : > { %v2427_v42 = vld [vmem:[%s3227_s19 + $0x68] sm:$0xf0] }
 0x33b   : > { %v1373_v44 = vpop.f32.mrf.mxu1  ;;  %v1439_v46 = vpop.f32.mrf.mxu0 }
 0x33c   : > { %v1482_v48 = vsel %vm1287_vm3, %v1439_v46, -inf  ;;  %v2426_v44 = vor.u32 %v2511_v40, %v2425_v45  ;;  %v2498_v45 = vld [vmem:[%s3227_s19 + $0x4] sm:$0xf]  ;;  %v2378_v40 = vor.u32 %v2499_v39, %v2377_v35 }
 0x33d   : > { %1483 = vmax.xlane.f32.xlu2 %v1482_v48  ;;  %v2417_v48 = vld [vmem:[%s3227_s19 + $0x50] sm:$0xf] }
 0x33e   : > { %1709 = vmatpush.bf16.msra.mxu0 %v2426_v44 }
 0x341   : > { %v3402_v32 = vpop.f32.mrf.mxu2 }
 0x343   : > { %v1441_v13 = vpop.f32.mrf.mxu0  ;;  %v1452_v49 = vpop.f32.mrf.mxu1 }
 0x344   : > { %v1485_v50 = vsel %vm1287_vm3, %v1452_v49, -inf  ;;  %v2509_v13 = vld [vmem:[%s3227_s19 + $0x54] sm:$0xf0] }
 0x345   : > { %1486 = vmax.xlane.f32.xlu0 %v1485_v50  ;;  %v2508_v50 = vld [vmem:[%s3227_s19 + $0x54] sm:$0xf] }
 0x349   : > { %v1392_v26 = vpop.f32.mrf.mxu2  ;;  %v3405_v55 = vpop.f32.mrf.mxu3 }
 0x34a   : > { %v2419_v26 = vld [vmem:[%s3227_s19 + $0x58] sm:$0xf0] }
 0x34b   : > { %v1454_v56 = vpop.f32.mrf.mxu1 }
 0x351   : > { %v1411_v57 = vpop.f32.mrf.mxu3  ;;  %v1465_v58 = vpop.f32.mrf.mxu2 }
 0x352   : > { %v1488_v59 = vsel %vm1287_vm3, %v1465_v58, -inf  ;;  %v2418_v57 = vor.u32 %v2509_v13, %v2417_v48  ;;  %v1413_v13 = vmul.f32 %v3349_v47, %v3397_v62  ;;  %v1416_v62 = vmul.f32 %v3349_v47, %v3405_v55 }
 0x353   : > { %1489 = vmax.xlane.f32.xlu1 %v1488_v59  ;;  %v2422_v59 = vor.u32 %v2508_v50, %v2419_v26 }
 0x354   : > { %1710 = vmatpush.bf16.msra.mxu0 %v2418_v57 }
 0x359   : > { %v1467_v60 = vpop.f32.mrf.mxu2  ;;  %v1478_v61 = vpop.f32.mrf.mxu3 }
 0x35a   : > { %v1491_v63 = vsel %vm1287_vm3, %v1478_v61, -inf  ;;  %v2409_v60 = vld [vmem:[%s3227_s19 + $0x40] sm:$0xf] }
 0x35b   : > { %1492 = vmax.xlane.f32.xlu2 %v1491_v63  ;;  %v2506_v63 = vld [vmem:[%s3227_s19 + $0x44] sm:$0xf] }
 0x361   : > { %v1480_v0 = vpop.f32.mrf.mxu3 }
 0x362   : > { %v2411_v0 = vld [vmem:[%s3227_s19 + $0x48] sm:$0xf0] }
 0x3b0   : > { %v1484_v1 = vpop.xlane.xlu2 %1483 }
 0x3b1   : > { %v1494_v2 = vsub.f32 %v1439_v46, %v1484_v1  ;;  %v2430_v46 = vor.u32 %v2510_v41, %v2427_v42  ;;  %v2382_v41 = vor.u32 %v2498_v45, %v2379_v16 }
 0x3b3   : > { %v1498_v3 = vmul.f32 1.442695, %v1494_v2  ;;  %1728 = vmatpush.bf16.msra.mxu1 %v2430_v46 }
 0x3b5   : > { %2652 = vpow2.f32 %v1498_v3  ;;  %v2414_v3 = vor.u32 %v2506_v63, %v2411_v0  ;;  %v1415_v0 = vmul.f32 %v3349_v47, %v3402_v32  ;;  %v1604_v32 = vld [vmem:[#allocation2 + $0x18] sm:$0xff] }
 0x3b7   : > { %1729 = vmatpush.bf16.msra.mxu1 %v2422_v59 }
 0x3b8   : > { %v1487_v4 = vpop.xlane.xlu0 %1486 }
 0x3b9   : > { %v1495_v5 = vsub.f32 %v1452_v49, %v1487_v4 }
 0x3bb   : > { %v2653_v6 = vpop.eup %2652  ;;  %v1500_v7 = vmul.f32 1.442695, %v1495_v5  ;;  %1730 = vmatpush.bf16.msra.mxu1 %v2414_v3 }
 0x3bc   : > { %v1506_v8 = vsel %vm1287_vm3, %v2653_v6, 0.0 }
 0x3bd   : > { %2654 = vpow2.f32 %v1500_v7  ;;  %1507 = vadd.xlane.f32.xlu0 %v1506_v8 }
 0x3c3   : > { %v2655_v9 = vpop.eup %2654 }
 0x3c4   : > { %v1509_v10 = vsel %vm1287_vm3, %v2655_v9, 0.0 }
 0x3c5   : > { %1510 = vadd.xlane.f32.xlu1 %v1509_v10 }
 0x3c6   : > { %v1490_v11 = vpop.xlane.xlu1 %1489 }
 0x3c7   : > { %v1496_v14 = vsub.f32 %v1465_v58, %v1490_v11  ;;  %v2401_v11 = vld [vmem:[%s3227_s19 + $0x30] sm:$0xf] }
 0x3c9   : > { %v1502_v17 = vmul.f32 1.442695, %v1496_v14  ;;  %v2505_v14 = vld [vmem:[%s3227_s19 + $0x34] sm:$0xf0] }
 0x3cb   : > { %2656 = vpow2.f32 %v1502_v17  ;;  %v2504_v17 = vld [vmem:[%s3227_s19 + $0x34] sm:$0xf] }
 0x3ce   : > { %v1493_v18 = vpop.xlane.xlu2 %1492 }
 0x3cf   : > { %v1497_v19 = vsub.f32 %v1478_v61, %v1493_v18  ;;  %v2507_v61 = vld [vmem:[%s3227_s19 + $0x44] sm:$0xf0]  ;;  %v2402_v18 = vor.u32 %v2505_v14, %v2401_v11  ;;  %v1605_v11 = vld [vmem:[#allocation2 + $0x10] sm:$0xff] }
 0x3d0   : > { %v2410_v1 = vor.u32 %v2507_v61, %v2409_v60 }
 0x3d1   : > { %v2657_v20 = vpop.eup %2656  ;;  %v1504_v15 = vmul.f32 1.442695, %v1497_v19  ;;  %v2403_v19 = vld [vmem:[%s3227_s19 + $0x38] sm:$0xf0] }
 0x3d2   : > { %v1512_v21 = vsel %vm1287_vm3, %v2657_v20, 0.0  ;;  %1711 = vmatpush.bf16.msra.mxu0 %v2410_v1 }
 0x3d3   : > { %2658 = vpow2.f32 %v1504_v15  ;;  %1513 = vadd.xlane.f32.xlu2 %v1512_v21  ;;  %v2393_v15 = vld [vmem:[%s3227_s19 + $0x20] sm:$0xf]  ;;  %v2503_v21 = vld [vmem:[%s3227_s19 + $0x24] sm:$0xf0] }
 0x3d6   : > { %1712 = vmatpush.bf16.msra.mxu0 %v2402_v18  ;;  %v1607_v18 = vld [vmem:[#allocation2 + $0x20] sm:$0xff] }
 0x3d9   : > { %v2659_v22 = vpop.eup %2658 }
 0x3da   : > { %v1515_v24 = vsel %vm1287_vm3, %v2659_v22, 0.0 }
 0x3db   : > { %1516 = vadd.xlane.f32.xlu0 %v1515_v24  ;;  %v2394_v24 = vor.u32 %v2503_v21, %v2393_v15 }
 0x3dd   : > { %1713 = vmatpush.bf16.msra.mxu0 %v2394_v24  ;;  %v1609_v24 = vld [vmem:[#allocation2 + $0x38] sm:$0xff] }
 0x430   : > { %v1508_v25 = vpop.xlane.xlu0 %1507 }
 0x431   : > { %2660 = vrcp.f32 %v1508_v25  ;;  %v2395_v25 = vld [vmem:[%s3227_s19 + $0x28] sm:$0xf0] }
 0x437   : > { %v2661_v31 = vpop.eup %2660 }
 0x438   : > { %v1522_v33 = vmul.f32 %v2661_v31, %v2653_v6  ;;  %v1511_v34 = vpop.xlane.xlu1 %1510 }
 0x439   : > { %2662 = vrcp.f32 %v1511_v34  ;;  %v2501_v34 = vld [vmem:[%s3227_s19 + $0x14] sm:$0xf0] }
 0x43a   : > { %v1526_v36 = vpack.c.bf16 %v1522_v33, %v1522_v33  ;;  %v2385_v33 = vld [vmem:[%s3227_s19 + $0x10] sm:$0xf] }
 0x43b   : > { %v2386_v23 = vor.u32 %v2501_v34, %v2385_v33 }
 0x43c   : > { %2371 = vmatmul.msk.bf16.vlgmr.msrb.gmra.mxu0 %vm1287_vm3, %v1526_v36  ;;  %v2500_v36 = vld [vmem:[%s3227_s19 + $0x14] sm:$0xf] }
 0x43d   : > { %v2390_v38 = vor.u32 %v2500_v36, %v2387_v37  ;;  %1714 = vmatpush.bf16.msra.mxu0 %v2386_v23 }
 0x43f   : > { %v2663_v49 = vpop.eup %2662 }
 0x440   : > { %v1523_v56 = vmul.f32 %v2663_v49, %v2655_v9  ;;  %v1414_v49 = vmul.f32 %v3349_v47, %v3399_v43 }
 0x441   : > { %1715 = vmatpush.bf16.msra.mxu0 %v2378_v40 }
 0x442   : > { %v1527_v58 = vpack.c.bf16 %v1523_v56, %v1523_v56 }
 0x444   : > { %2372 = vmatmul.msk.bf16.vlgmr.msrb.gmra.mxu1 %vm1287_vm3, %v1527_v58 }
 0x446   : > { %v1514_v2 = vpop.xlane.xlu2 %1513 }
 0x447   : > { %2664 = vrcp.f32 %v1514_v2 }
 0x44d   : > { %v2665_v4 = vpop.eup %2664 }
 0x44e   : > { %v1524_v5 = vmul.f32 %v2665_v4, %v2657_v20  ;;  %v1517_v6 = vpop.xlane.xlu0 %1516  ;;  %v2406_v20 = vor.u32 %v2504_v17, %v2403_v19  ;;  %v1606_v17 = vld [vmem:[#allocation2 + $0x8] sm:$0xff] }
 0x44f   : > { %2666 = vrcp.f32 %v1517_v6  ;;  %v1603_v6 = vld [vmem:[#allocation2] sm:$0xff] }
 0x450   : > { %v1528_v7 = vpack.c.bf16 %v1524_v5, %v1524_v5  ;;  %1731 = vmatpush.bf16.msra.mxu1 %v2406_v20  ;;  %v1602_v5 = vld [vmem:[#allocation2 + $0x30] sm:$0xff] }
 0x452   : > { %2373 = vmatmul.msk.bf16.vlgmr.msra.gmra.mxu2 %vm1287_vm3, %v1528_v7 }
 0x455   : > { %v2667_v8 = vpop.eup %2666 }
 0x456   : > { %v1525_v9 = vmul.f32 %v2667_v8, %v2659_v22  ;;  %v2502_v22 = vld [vmem:[%s3227_s19 + $0x24] sm:$0xf] }
 0x457   : > { %v2398_v31 = vor.u32 %v2502_v22, %v2395_v25  ;;  %v1608_v22 = vld [vmem:[#allocation2 + $0x28] sm:$0xff] }
 0x458   : > { %v1529_v10 = vpack.c.bf16 %v1525_v9, %v1525_v9 }
 0x459   : > { %1732 = vmatpush.bf16.msra.mxu1 %v2398_v31 }
 0x45a   : > { %2374 = vmatmul.msk.bf16.vlgmr.msra.gmra.mxu3 %vm1287_vm3, %v1529_v10 }
 0x45d   : > { %1733 = vmatpush.bf16.msra.mxu1 %v2390_v38 }
 0x461   : > { %1734 = vmatpush.bf16.msra.mxu1 %v2382_v41 }
 0x4b9   : > { %v1542_v42 = vpop.f32.mrf.mxu0 }
 0x4ba   : > { %v1594_v44 = vmul.f32 %v3322_v12, %v1542_v42 }
 0x4bc   : > { %v1598_v26 = vadd.f32 %v1594_v44, %v1413_v13 }
 0x4c1   : > { %v1544_v46 = vpop.f32.mrf.mxu0  ;;  %v1558_v48 = vpop.f32.mrf.mxu1 }
 0x4c2   : > { %v1595_v50 = vmul.f32 %v3322_v12, %v1558_v48 }
 0x4c4   : > { %v1599_v56 = vadd.f32 %v1595_v50, %v1414_v49 }
 0x4c6   : > { %v1610_v57 = vpack.c.bf16 %v1599_v56, %v1598_v26 }
 0x4c8   : > { %1716 = vmatmul.bf16.vlgmr.msra.gmra.mxu0 %v1610_v57  ;;  %1735 = vmatmul.bf16.vlgmr.msra.gmra.mxu1 %v1610_v57 }
 0x4c9   : > { %v1560_v58 = vpop.f32.mrf.mxu1 }
 0x4d5   : > { %v1574_v59 = vpop.f32.mrf.mxu2 }
 0x4d6   : > { %v1596_v60 = vmul.f32 %v3322_v12, %v1574_v59 }
 0x4d8   : > { %v1600_v1 = vadd.f32 %v1596_v60, %v1415_v0 }
 0x4dd   : > { %v1576_v61 = vpop.f32.mrf.mxu2  ;;  %v1590_v63 = vpop.f32.mrf.mxu3 }
 0x4de   : > { %v1597_v43 = vmul.f32 %v3322_v12, %v1590_v63 }
 0x4e0   : > { %v1601_v2 = vadd.f32 %v1597_v43, %v1416_v62 }
 0x4e2   : > { %v1611_v3 = vpack.c.bf16 %v1601_v2, %v1600_v1 }
 0x4e4   : > { %1721 = vmatmul.bf16.gmra.mxu0 %v1611_v3  ;;  %1740 = vmatmul.bf16.gmra.mxu1 %v1611_v3 }
 0x4e5   : > { %v1592_v4 = vpop.f32.mrf.mxu3 }
 0x545   : > { %v1717_v7 = vpop.f32.mrf.mxu0  ;;  %v1736_v8 = vpop.f32.mrf.mxu1 }
 0x546   : > { %v1746_v9 = vadd.f32 %v1717_v7, %v1602_v5  ;;  %v1747_v10 = vadd.f32 %v1736_v8, %v1603_v6 }
 0x548   : > { %1754 = vst [vmem:[#allocation2 + $0x30] sm:$0xff] %v1746_v9 }
 0x549   : > { %1755 = vst [vmem:[#allocation2] sm:$0xff] %v1747_v10 }
 0x54d   : > { %v1719_v14 = vpop.f32.mrf.mxu0  ;;  %v1738_v47 = vpop.f32.mrf.mxu1 }
 0x54e   : > { %v1748_v55 = vadd.f32 %v1719_v14, %v1604_v32  ;;  %v1749_v12 = vadd.f32 %v1738_v47, %v1605_v11 }
 0x550   : > { %1756 = vst [vmem:[#allocation2 + $0x18] sm:$0xff] %v1748_v55 }
 0x551   : > { %1757 = vst [vmem:[#allocation2 + $0x10] sm:$0xff] %v1749_v12 }
 0x561   : > { %v1722_v19 = vpop.f32.mrf.mxu0  ;;  %v1741_v20 = vpop.f32.mrf.mxu1 }
 0x562   : > { %v1750_v15 = vadd.f32 %v1722_v19, %v1606_v17  ;;  %v1751_v21 = vadd.f32 %v1741_v20, %v1607_v18 }
 0x564   : > { %1758 = vst [vmem:[#allocation2 + $0x8] sm:$0xff] %v1750_v15 }
 0x565   : > { %1759 = vst [vmem:[#allocation2 + $0x20] sm:$0xff] %v1751_v21 }
 0x569   : > { %v1724_v25 = vpop.f32.mrf.mxu0  ;;  %v1743_v31 = vpop.f32.mrf.mxu1  ;;  %1765 = sbr.rel (%p2439_p3) target bundleno = 1680 (0x690), region = 104 }
 0x56a   : > { %v1752_v33 = vadd.f32 %v1724_v25, %v1608_v22  ;;  %v1753_v34 = vadd.f32 %v1743_v31, %v1609_v24 }
 0x56c   : > { %1760 = vst [vmem:[#allocation2 + $0x28] sm:$0xff] %v1752_v33 }
 0x56d   : > { %1761 = vst [vmem:[#allocation2 + $0x38] sm:$0xff] %v1753_v34 }
 0x56e   : > { %v1770_v36 = vld [vmem:[#allocation2 + $0x8] sm:$0xff]  ;;  %v1771_v23 = vld [vmem:[#allocation2 + $0x20] sm:$0xff]  ;;  %v1766_v39 = vld [vmem:[#allocation2 + $0x30] sm:$0xff] }
 0x56f   : > { %v1774_v37 = vld [vmem:[%s3583_s16] sm:$0x3]  ;;  %v1768_v41 = vld [vmem:[#allocation2 + $0x18] sm:$0xff]  ;;  %v1769_v42 = vld [vmem:[#allocation2 + $0x10] sm:$0xff] }
 0x570   : > { %v1776_v38 = vperm.slane %v1774_v37, 0  ;;  %v1777_v35 = vperm.slane %v1774_v37, 1  ;;  %v1767_v45 = vld [vmem:[#allocation2] sm:$0xff] }
 0x572   : > { %v1784_v44 = vadd.f32 %v1776_v38, %v1770_v36  ;;  %v1785_v46 = vadd.f32 %v1777_v35, %v1771_v23  ;;  %v1780_v48 = vadd.f32 %v1776_v38, %v1766_v39  ;;  %v1781_v13 = vadd.f32 %v1777_v35, %v1767_v45 }
 0x573   : > { %v1772_v40 = vld [vmem:[#allocation2 + $0x28] sm:$0xff]  ;;  %v1782_v26 = vadd.f32 %v1776_v38, %v1768_v41  ;;  %v1783_v56 = vadd.f32 %v1777_v35, %v1769_v42 }
 0x574   : > { %v1773_v16 = vld [vmem:[#allocation2 + $0x38] sm:$0xff]  ;;  %v1786_v49 = vadd.f32 %v1776_v38, %v1772_v40  ;;  %v1792_v57 = vadd.f32 %v1784_v44, %v3302_v51  ;;  %v1793_v58 = vadd.f32 %v1785_v46, %v3306_v53  ;;  %v1788_v59 = vadd.f32 %v1780_v48, %v3276_v27 }
 0x575   : > { %v1787_v50 = vadd.f32 %v1777_v35, %v1773_v16  ;;  %v1789_v60 = vadd.f32 %v1781_v13, %v3280_v29  ;;  %v1790_v43 = vadd.f32 %v1782_v26, %v3278_v28  ;;  %v1791_v1 = vadd.f32 %v1783_v56, %v3282_v30 }
 0x576   : > { %v1804_v61 = vadd.f32 %v1793_v58, %v1792_v57  ;;  %v1794_v0 = vadd.f32 %v1786_v49, %v3304_v52  ;;  %v2995_v53 = vmov 256.0  }
 0x577   : > { %v1798_v63 = vadd.f32 %v1789_v60, %v1788_v59  ;;  %v1795_v62 = vadd.f32 %v1787_v50, %v3308_v54  ;;  %v1801_v51 = vadd.f32 %v1791_v1, %v1790_v43  ;;  %2668 = vrcp.f32 %v2995_v53 }
 0x578   : > { %1805 = vadd.xlane.f32.xlu1 %v1804_v61 }
 0x579   : > { %1799 = vadd.xlane.f32.xlu0 %v1798_v63  ;;  %v1807_v2 = vadd.f32 %v1795_v62, %v1794_v0 }
 0x57d   : > { %v2669_v27 = vpop.eup %2668 }
 0x57e   : > { %v1811_v29 = vmul.f32 256.0, %v2669_v27  ;;  %vm1815_vm4 = vweird.f32 %v2669_v27 }
 0x580   : > { %1808 = vadd.xlane.f32.xlu1 %v1807_v2  ;;  %v1812_v3 = vsub.f32 1.0, %v1811_v29 }
 0x581   : > { %1802 = vadd.xlane.f32.xlu0 %v1801_v51 }
 0x582   : > { %v1813_v4 = vmul.f32 %v2669_v27, %v1812_v3 }
 0x584   : > { %v1814_v5 = vadd.f32 %v2669_v27, %v1813_v4 }
 0x586   : > { %v1816_v52 = vsel %vm1815_vm4, %v2669_v27, %v1814_v5 }
 0x5eb   : > { %v1806_v6 = vpop.xlane.xlu1 %1805 }
 0x5ec   : > { %v1800_v7 = vpop.xlane.xlu0 %1799  ;;  %v1819_v54 = vmul.f32 %v1816_v52, %v1806_v6 }
 0x5ed   : > { %v1817_v8 = vmul.f32 %v1816_v52, %v1800_v7 }
 0x5ee   : > { %v3473_v28 = vsub.f32 %v1792_v57, %v1819_v54  ;;  %v3475_v30 = vsub.f32 %v1793_v58, %v1819_v54 }
 0x5ef   : > { %v3477_v9 = vsub.f32 %v1788_v59, %v1817_v8  ;;  %v3479_v10 = vsub.f32 %v1789_v60, %v1817_v8  ;;  %v1796_v59 = vld [vmem:[#allocation12] sm:$0x3] }
 0x5f0   : > { %v1833_v32 = vmul.f32 %v3473_v28, %v3473_v28  ;;  %v1834_v11 = vmul.f32 %v3475_v30, %v3475_v30  ;;  %v1907_v53 = vperm.slane %v1796_v59, 1 }
 0x5f1   : > { %v1829_v14 = vmul.f32 %v3477_v9, %v3477_v9  ;;  %v1830_v47 = vmul.f32 %v3479_v10, %v3479_v10 }
 0x5f2   : > { %v1843_v55 = vadd.f32 %v1834_v11, %v1833_v32 }
 0x5f3   : > { %v1837_v12 = vadd.f32 %v1830_v47, %v1829_v14  ;;  %v1809_v17 = vpop.xlane.xlu1 %1808 }
 0x5f4   : > { %v1803_v18 = vpop.xlane.xlu0 %1802  ;;  %v1820_v19 = vmul.f32 %v1816_v52, %v1809_v17  ;;  %1844 = vadd.xlane.f32.xlu0 %v1843_v55 }
 0x5f5   : > { %v1818_v20 = vmul.f32 %v1816_v52, %v1803_v18  ;;  %1838 = vadd.xlane.f32.xlu2 %v1837_v12 }
 0x5f6   : > { %v3489_v15 = vsub.f32 %v1794_v0, %v1820_v19  ;;  %v3491_v21 = vsub.f32 %v1795_v62, %v1820_v19  ;;  %v1797_v0 = vld [vmem:[%s3584_s13] sm:$0x3] }
 0x5f7   : > { %v3493_v22 = vsub.f32 %v1790_v43, %v1818_v20  ;;  %v3495_v24 = vsub.f32 %v1791_v1, %v1818_v20  ;;  %v1906_v1 = vperm.slane %v1796_v59, 0  ;;  %v1919_v3 = vperm.slane %v1797_v0, 0 }
 0x5f8   : > { %v1835_v25 = vmul.f32 %v3489_v15, %v3489_v15  ;;  %v1836_v31 = vmul.f32 %v3491_v21, %v3491_v21  ;;  %v1920_v4 = vperm.slane %v1797_v0, 1 }
 0x5f9   : > { %v1831_v33 = vmul.f32 %v3493_v22, %v3493_v22  ;;  %v1832_v34 = vmul.f32 %v3495_v24, %v3495_v24 }
 0x5fa   : > { %v1846_v36 = vadd.f32 %v1836_v31, %v1835_v25 }
 0x5fb   : > { %v1840_v23 = vadd.f32 %v1832_v34, %v1831_v33 }
 0x5fc   : > { %1847 = vadd.xlane.f32.xlu1 %v1846_v36 }
 0x5fd   : > { %1841 = vadd.xlane.f32.xlu2 %v1840_v23 }
 0x667   : > { %v1845_v38 = vpop.xlane.xlu0 %1844 }
 0x668   : > { %v1839_v37 = vpop.xlane.xlu2 %1838  ;;  %v1851_v39 = vmul.f32 %v1845_v38, %v1816_v52 }
 0x669   : > { %v1849_v35 = vmul.f32 %v1839_v37, %v1816_v52 }
 0x66a   : > { %v1855_v40 = vadd.f32 1e-05, %v1851_v39 }
 0x66b   : > { %v1853_v45 = vadd.f32 1e-05, %v1849_v35 }
 0x66c   : > { %vm1883_vm9 = vweird.f32 %v1855_v40 }
 0x66d   : > { %2670 = vrsqrt.f32 %v1853_v45  ;;  %vm1863_vm7 = vweird.f32 %v1853_v45 }
 0x66e   : > { %2672 = vrsqrt.f32 %v1855_v40 }
 0x66f   : > { %v1848_v16 = vpop.xlane.xlu1 %1847 }
 0x670   : > { %v1842_v41 = vpop.xlane.xlu2 %1841  ;;  %v1852_v42 = vmul.f32 %v1848_v16, %v1816_v52 }
 0x671   : > { %v1850_v44 = vmul.f32 %v1842_v41, %v1816_v52 }
 0x672   : > { %v1856_v48 = vadd.f32 1e-05, %v1852_v42 }
 0x673   : > { %v2671_v46 = vpop.eup %2670  ;;  %v1854_v13 = vadd.f32 1e-05, %v1850_v44 }
 0x674   : > { %v2673_v49 = vpop.eup %2672  ;;  %v1858_v50 = vmul.f32 %v2671_v46, %v1853_v45  ;;  %2674 = vrsqrt.f32 %v1856_v48  ;;  %vm1864_vm5 = vweird.f32 %v2671_v46  ;;  %vm1893_vm13 = vweird.f32 %v1856_v48 }
 0x675   : > { %v1878_v26 = vmul.f32 %v2673_v49, %v1855_v40  ;;  %2676 = vrsqrt.f32 %v1854_v13  ;;  %vm1884_vm6 = vweird.f32 %v2673_v49  ;;  %vm1865_vm8 = vmor %vm1863_vm7, %vm1864_vm5  ;;  %vm1873_vm15 = vweird.f32 %v1854_v13 }
 0x676   : > { %v1859_v56 = vmul.f32 %v2671_v46, %v1858_v50  ;;  %vm1885_vm10 = vmor %vm1883_vm9, %vm1884_vm6 }
 0x677   : > { %v1879_v57 = vmul.f32 %v2673_v49, %v1878_v26 }
 0x678   : > { %v1860_v58 = vmul.f32 0.5, %v1859_v56 }
 0x679   : > { %v1880_v60 = vmul.f32 0.5, %v1879_v57 }
 0x67a   : > { %v1861_v61 = vsub.f32 1.5, %v1860_v58  ;;  %v2675_v63 = vpop.eup %2674 }
 0x67b   : > { %v1881_v62 = vsub.f32 1.5, %v1880_v60  ;;  %v2677_v43 = vpop.eup %2676  ;;  %v1888_v51 = vmul.f32 %v2675_v63, %v1856_v48  ;;  %vm1894_vm11 = vweird.f32 %v2675_v63 }
 0x67c   : > { %v1862_v2 = vmul.f32 %v2671_v46, %v1861_v61  ;;  %v1868_v29 = vmul.f32 %v2677_v43, %v1854_v13  ;;  %vm1874_vm12 = vweird.f32 %v2677_v43  ;;  %vm1895_vm14 = vmor %vm1893_vm13, %vm1894_vm11 }
 0x67d   : > { %v1882_v27 = vmul.f32 %v2673_v49, %v1881_v62  ;;  %v1889_v52 = vmul.f32 %v2675_v63, %v1888_v51  ;;  %vm1875_vm0 = vmor %vm1873_vm15, %vm1874_vm12 }
 0x67e   : > { %v1866_v5 = vsel %vm1865_vm8, %v2671_v46, %v1862_v2  ;;  %v1869_v8 = vmul.f32 %v2677_v43, %v1868_v29 }
 0x67f   : > { %v1897_v6 = vmul.f32 %v1866_v5, %v3477_v9  ;;  %v1898_v7 = vmul.f32 %v1866_v5, %v3479_v10  ;;  %v1886_v54 = vsel %vm1885_vm10, %v2673_v49, %v1882_v27  ;;  %v1890_v14 = vmul.f32 0.5, %v1889_v52 }
 0x680   : > { %v1901_v32 = vmul.f32 %v1886_v54, %v3473_v28  ;;  %v1902_v11 = vmul.f32 %v1886_v54, %v3475_v30  ;;  %v1870_v12 = vmul.f32 0.5, %v1869_v8 }
 0x681   : > { %v1910_v47 = vmul.f32 %v1906_v1, %v1897_v6  ;;  %v1911_v55 = vmul.f32 %v1907_v53, %v1898_v7  ;;  %v1891_v19 = vsub.f32 1.5, %v1890_v14 }
 0x682   : > { %v1914_v17 = vmul.f32 %v1906_v1, %v1901_v32  ;;  %v1915_v18 = vmul.f32 %v1907_v53, %v1902_v11  ;;  %v1871_v31 = vsub.f32 1.5, %v1870_v12 }
 0x683   : > { %v1923_v20 = vadd.f32 %v1919_v3, %v1910_v47  ;;  %v1924_v25 = vadd.f32 %v1920_v4, %v1911_v55  ;;  %v1892_v33 = vmul.f32 %v2675_v63, %v1891_v19 }
 0x684   : > { %v1927_v9 = vadd.f32 %v1919_v3, %v1914_v17  ;;  %v1928_v10 = vadd.f32 %v1920_v4, %v1915_v18  ;;  %v1872_v28 = vmul.f32 %v2677_v43, %v1871_v31 }
 0x685   : > { %1931 = vst [vmem:[#allocation13] sm:$0xff] %v1923_v20  ;;  %v1896_v30 = vsel %vm1895_vm14, %v2675_v63, %v1892_v33 }
 0x686   : > { %1932 = vst [vmem:[#allocation13 + $0x8] sm:$0xff] %v1924_v25  ;;  %v1903_v34 = vmul.f32 %v1896_v30, %v3489_v15  ;;  %v1904_v36 = vmul.f32 %v1896_v30, %v3491_v21  ;;  %v1876_v23 = vsel %vm1875_vm0, %v2677_v43, %v1872_v28 }
 0x687   : > { %1935 = vst [vmem:[#allocation13 + $0x20] sm:$0xff] %v1927_v9  ;;  %v1899_v37 = vmul.f32 %v1876_v23, %v3493_v22  ;;  %v1900_v38 = vmul.f32 %v1876_v23, %v3495_v24 }
 0x688   : > { %1936 = vst [vmem:[#allocation13 + $0x28] sm:$0xff] %v1928_v10  ;;  %v1916_v35 = vmul.f32 %v1906_v1, %v1903_v34  ;;  %v1917_v39 = vmul.f32 %v1907_v53, %v1904_v36 }
 0x689   : > { %v1912_v45 = vmul.f32 %v1906_v1, %v1899_v37  ;;  %v1913_v40 = vmul.f32 %v1907_v53, %v1900_v38 }
 0x68a   : > { %v1929_v16 = vadd.f32 %v1919_v3, %v1916_v35  ;;  %v1930_v41 = vadd.f32 %v1920_v4, %v1917_v39 }
 0x68b   : > { %v1925_v42 = vadd.f32 %v1919_v3, %v1912_v45  ;;  %v1926_v44 = vadd.f32 %v1920_v4, %v1913_v40 }
 0x68c   : > { %1937 = vst [vmem:[#allocation13 + $0x30] sm:$0xff] %v1929_v16 }
 0x68d   : > { %1938 = vst [vmem:[#allocation13 + $0x38] sm:$0xff] %v1930_v41 }
 0x68e   : > { %1933 = vst [vmem:[#allocation13 + $0x10] sm:$0xff] %v1925_v42 }
 0x68f   : > { %1934 = vst [vmem:[#allocation13 + $0x18] sm:$0xff] %v1926_v44 }
 0x690 PF: > { %p2568_p4 = scmp.eq.s32.totalorder %s3093_s27, 1  ;;  %s3585_s0 = sld [smem:[#allocation32_spill]] }
 0x691   : > { %s2996_s26 = smov [#allocation13]   ;;  %s2997_s17 = smov 256  }
 0x692   : > { %s1948_s21 = sshll.u32 %s2996_s26, 4  ;;  %s2998_s18 = smov 16   ;;  %s1949_s21 = int_to_ptr.vmem [resolvable:$true] %s1948_s21 }
 0x696   : > { %s1950_s29 = sshll.u32 %s3585_s0, 4  ;;  %s1951_s29 = int_to_ptr.hbm [resolvable:$true] %s1950_s29 }
 0x697   : > { %2535 = dma.vmem_to_hbm [thread:$0]  (%p2568_p4), %s1949_s21, 1024, %s1951_s29, [#allocation5], %s2997_s17, %s2997_s17, %s2998_s18  }
 0x698   : > { %2957 = dma.done.wait (%p2568_p4), [#allocation5], 1024  }
 0x699   : > { %2959 = vsyncadd (%p2568_p4), [#allocation5], 4294966272 }
 0x69a PF: > { %s3586_s23 = sld [smem:[#allocation20_spill]]  ;;  %s3590_s21 = smov %s2966_s22 }
 0x69b   : > { %s3587_s28 = sld [smem:[#allocation19_spill]]  ;;  %s3592_s24 = smov %s2978_s25 }
 0x69c   : > { %s3589_s27 = sld [smem:[#allocation21_spill]] }
 0x6a0   : > { %s25_s26 = sadd.s32 1, %s3586_s23   ;;  %s3588_s23 = sld [smem:[#allocation22_spill]] }
 0x6a1   : > { %p22_p5 = scmp.ge.s32.totalorder %s25_s26, 4   ;;  %s3591_s22 = smov %s3587_s28 }
 0x6a2   : > { %s3593_s25 = smov %s3589_s27 }
 0x6a3   :  { %24 = sbr.rel (!%p22_p5) target bundleno = 16 (0x10), region = 168 }
 0x6a8   :  { %1967 = vsyncpa [#allocation4], 1 }
 0x6a9   :  { %1969 = vsyncpa [#allocation4 + $0x1], 1 }
 0x6aa   :  { %1970 = vsyncpa [#allocation7], 1 }
 0x6ab   :  { %1971 = vsyncpa [#allocation5], 1 }
 0x6ac   :  { %1973 = vsyncpa [#allocation5 + $0x1], 1 }

</bundles_post_ra>
